<compile_context>
chip_gen: v6e
topology: v6e:2x2x1
jax: 0.10.0
libtpu: 0.0.40
codegen_flags: <defaults>
</compile_context>

<pallas_src>
import functools

import jax
import jax.numpy as jnp
from jax import lax
from jax.experimental import pallas as pl
from jax.experimental.pallas import tpu as pltpu

_SUBLANE = 8


def _round_up(x, m):
    return (x + m - 1) // m * m


def _conv_row_tile_kernel(xm_ref, xh_ref, w_ref, b_ref, o_ref, *,
                          kh_taps, kw_taps, row_stride, m_rows):
    """One (batch, row-tile) step: KH MXU matmuls of K = KW*Cin.

    xm_ref: (1, M, Cin)              main flat tile, M = row_tile * Wp_pad
    xh_ref: (1, halo*Wp_pad, Cin)    halo rows directly below the tile
    w_ref:  (KH, KW*Cin, Cout)       folded weights (row index = kw*Cin + ci)
    b_ref:  (1, Cout)                bias, f32
    o_ref:  (1, M, Cout)             output tile (the wrap-around columns
                                     beyond Wo are garbage; sliced off outside)
    """
    # (M + halo*Wp_pad, Cin); both pieces are sublane-aligned (mult. of 8 rows).
    rows = jnp.concatenate([xm_ref[0], xh_ref[0]], axis=0)

    acc = None
    for kh in range(kh_taps):
        base = kh * row_stride
        taps = [rows[base + kw: base + kw + m_rows] for kw in range(kw_taps)]
        p = taps[0] if kw_taps == 1 else jnp.concatenate(taps, axis=-1)
        d = jnp.dot(p, w_ref[kh], preferred_element_type=jnp.float32)
        acc = d if acc is None else acc + d

    acc = acc + b_ref[...]                              # (1, Cout) broadcast
    o_ref[0] = jnp.maximum(acc, 0.0).astype(o_ref.dtype)


def conv_block(x, weight_oihw, bias, padding=(0, 1, 0, 1), *,
               compute_dtype=jnp.bfloat16, out_dtype=None,
               channels_last=False, target_tile_bytes=1 << 20,
               max_row_tile=256, vmem_budget_bytes=24 << 20):
    """ConvBlock forward: pad -> conv(KxK, stride 1, bias) -> ReLU.

    x:            (N, Cin, H, W)      [or (N, H, W, Cin) if channels_last]
    weight_oihw:  (Cout, Cin, KH, KW) PyTorch Conv2d layout
    bias:         (Cout,)
    returns:      (N, Cout, Ho, Wo)   [or NHWC if channels_last]

    compute_dtype=bfloat16 feeds bf16 operands to the MXU with f32
    accumulation (recommended on all TPU generations); pass jnp.float32 for
    bit-tight numerics.  Stride is fixed at 1 (the ConvBlock default).
    """
    pad_l, pad_r, pad_t, pad_b = padding
    if channels_last:
        N, H, W, Cin = x.shape
        x_nhwc = x
    else:
        N, Cin, H, W = x.shape
        x_nhwc = jnp.transpose(x, (0, 2, 3, 1))
    Cout, Cin_w, KH, KW = weight_oihw.shape
    assert Cin_w == Cin, (Cin_w, Cin)
    if out_dtype is None:
        out_dtype = x.dtype

    Hp = H + pad_t + pad_b
    Wp = W + pad_l + pad_r
    Ho = Hp - KH + 1                       # stride 1, VALID after explicit pad
    Wo = Wp - KW + 1

    cd = jnp.dtype(compute_dtype).itemsize
    od = jnp.dtype(out_dtype).itemsize

    # Padded row stride: keeps every flat row tile a multiple of 8 sublanes.
    Wp_pad = _round_up(Wp, _SUBLANE)

    # Halo rows below each tile: >= KH (covers KH-1 rows + the kw overrun of
    # the wrap-around columns), rounded so it divides the row tile.
    halo_rows = _round_up(max(KH, 1), 4)
    q = halo_rows                          # row-tile quantum

    # ---- pick the row tile: ~1 MiB of activations per grid step, bounded
    # VMEM working set (v7x has only 64 MiB physical VMEM). ----
    row_bytes = Wp_pad * Cin * cd

    def footprint(t):
        m = t * Wp_pad
        return (2 * m * Cin * cd                        # main tile (dbuf)
                + 2 * halo_rows * Wp_pad * Cin * cd     # halo tile (dbuf)
                + 2 * KH * KW * Cin * Cout * cd         # weights
                + 2 * m * Cout * od                     # output tile (dbuf)
                + (m + halo_rows * Wp_pad) * Cin * cd   # concatenated rows
                + 2 * m * KW * Cin * cd                 # kw taps + patches
                + m * Cout * 4)                         # f32 accumulator

    th = _round_up(max(pl.cdiv(target_tile_bytes, row_bytes), 1), q)
    th = max(q, min(th, _round_up(max_row_tile, q), _round_up(Ho, q)))
    while th > q and footprint(th) > vmem_budget_bytes:
        th -= q

    Ho_pad = _round_up(Ho, th)
    Hp_pad = Ho_pad + halo_rows
    M = th * Wp_pad

    # ---- layout: cast first (halves downstream HBM traffic), then one pad
    # that also folds in the tile/halo padding.  Extra zero rows/columns only
    # feed outputs that are sliced away below. ----
    xc = x_nhwc.astype(compute_dtype)
    xc = jnp.pad(xc, ((0, 0),
                      (pad_t, Hp_pad - H - pad_t),
                      (pad_l, Wp_pad - W - pad_l),
                      (0, 0)))
    x_flat = xc.reshape(N, Hp_pad * Wp_pad, Cin)        # free reshape

    # OIHW -> (KH, KW*Cin, Cout): row index kw*Cin + ci matches the kernel's
    # kw-concatenated taps.
    w = jnp.transpose(weight_oihw, (2, 3, 1, 0)).reshape(KH, KW * Cin, Cout)
    w = w.astype(compute_dtype)
    b = bias.astype(jnp.float32).reshape(1, Cout)

    grid = (N, Ho_pad // th)
    kernel = functools.partial(_conv_row_tile_kernel, kh_taps=KH, kw_taps=KW,
                               row_stride=Wp_pad, m_rows=M)

    cost = pl.CostEstimate(
        flops=2 * N * Ho * Wo * KH * KW * Cin * Cout,
        transcendentals=0,
        bytes_accessed=(N * Hp_pad * Wp_pad * Cin * cd            # input
                        + N * grid[1] * halo_rows * Wp_pad * Cin * cd
                        + KH * KW * Cin * Cout * cd + Cout * 4    # params
                        + N * Ho_pad * Wp_pad * Cout * od))       # output

    out = pl.pallas_call(
        kernel,
        out_shape=jax.ShapeDtypeStruct((N, Ho_pad * Wp_pad, Cout), out_dtype),
        grid_spec=pltpu.PrefetchScalarGridSpec(
            num_scalar_prefetch=0,
            grid=grid,
            in_specs=[
                # Main row tile: read exactly once.
                pl.BlockSpec((1, M, Cin), lambda n, i: (n, i, 0)),
                # Halo: the halo_rows rows immediately below the tile.
                pl.BlockSpec((1, halo_rows * Wp_pad, Cin),
                             lambda n, i: (n, (i + 1) * (th // halo_rows), 0)),
                # Folded weights + bias: constant blocks, revisited each step.
                pl.BlockSpec((KH, KW * Cin, Cout), lambda n, i: (0, 0, 0)),
                pl.BlockSpec((1, Cout), lambda n, i: (0, 0)),
            ],
            out_specs=pl.BlockSpec((1, M, Cout), lambda n, i: (n, i, 0)),
        ),
        compiler_params=pltpu.CompilerParams(
            dimension_semantics=("parallel", "parallel"),
            # Working set is capped at ~24 MiB above; 48 MiB scoped VMEM keeps
            # double-buffering alive and still fits v7x's 64 MiB physical.
            vmem_limit_bytes=48 * 1024 * 1024,
        ),
        cost_estimate=cost,
    )(x_flat, x_flat, w, b)

    out = out.reshape(N, Ho_pad, Wp_pad, Cout)[:, :Ho, :Wo, :]
    if channels_last:
        return out
    return jnp.transpose(out, (0, 3, 1, 2))


def _reference(x_nchw, weight_oihw, bias, padding=(0, 1, 0, 1)):
    pad_l, pad_r, pad_t, pad_b = padding
    xp = jnp.pad(x_nchw, ((0, 0), (0, 0), (pad_t, pad_b), (pad_l, pad_r)))
    y = lax.conv_general_dilated(
        xp, weight_oihw, window_strides=(1, 1), padding="VALID",
        dimension_numbers=("NCHW", "OIHW", "NCHW"),
        precision=lax.Precision.HIGHEST)
    y = y + bias.reshape(1, -1, 1, 1)
    return jnp.maximum(y, 0.0)


if __name__ == "__main__":
    key = jax.random.PRNGKey(0)
    k_x, k_w, k_b = jax.random.split(key, 3)

    N, Cin, H, W = 2, 4, 16, 16
    Cout, KH, KW = 8, 3, 3

    x = jax.random.normal(k_x, (N, Cin, H, W), dtype=jnp.float32)
    # Deterministic Conv2d-like init (no checkpoint load).
    fan_in = Cin * KH * KW
    bound = 1.0 / jnp.sqrt(fan_in)
    weight = jax.random.uniform(k_w, (Cout, Cin, KH, KW),
                                minval=-bound, maxval=bound, dtype=jnp.float32)
    bias = jax.random.uniform(k_b, (Cout,),
                              minval=-bound, maxval=bound, dtype=jnp.float32)

    # Default path: bf16 operands on the MXU, f32 accumulation.
    out = jax.block_until_ready(conv_block(x, weight, bias))
    assert out.shape == (N, Cout, H - 1, W - 1), out.shape
    x_b = x.astype(jnp.bfloat16).astype(jnp.float32)
    w_b = weight.astype(jnp.bfloat16).astype(jnp.float32)
    ref_b = jax.block_until_ready(_reference(x_b, w_b, bias))
    assert jnp.allclose(out, ref_b, atol=2e-3, rtol=2e-3), \
        float(jnp.max(jnp.abs(out - ref_b)))

    # Full-f32 path: tight check against the XLA reference.
    out32 = jax.block_until_ready(
        conv_block(x, weight, bias, compute_dtype=jnp.float32))
    ref = jax.block_until_ready(_reference(x, weight, bias))
    assert jnp.allclose(out32, ref, atol=1e-5, rtol=1e-5), \
        float(jnp.max(jnp.abs(out32 - ref)))

    # TODO(synk): batch_norm=False in the default ConvBlock config, so
    # BatchNorm2d is not implemented.
    print("KERNEL_OK")
</pallas_src>

<mosaic_0001>
module attributes {stable_mosaic.version = 11 : i64} {
  func.func @_conv_row_tile_kernel(%arg0: i32, %arg1: i32, %arg2: memref<1x384x4xbf16, #tpu.memory_space<vmem>>, %arg3: memref<1x96x4xbf16, #tpu.memory_space<vmem>>, %arg4: memref<3x12x8xbf16, #tpu.memory_space<vmem>>, %arg5: memref<1x8xf32, #tpu.memory_space<vmem>>, %arg6: memref<1x384x8xf32, #tpu.memory_space<vmem>>) attributes {dimension_semantics = [#tpu.dimension_semantics<parallel>, #tpu.dimension_semantics<parallel>], iteration_bounds = array<i64: 2, 1>, scalar_prefetch = 0 : i64, scratch_operands = 0 : i64, tpu.core_type = #tpu.core_type<tc>, window_params = [{transform_indices = @transform_0, window_bounds = array<i64: 1, 384, 4>}, {transform_indices = @transform_1, window_bounds = array<i64: 1, 96, 4>}, {pipeline_mode = #tpu.pipeline_mode<synchronous>, transform_indices = @transform_2, window_bounds = array<i64: 3, 12, 8>}, {pipeline_mode = #tpu.pipeline_mode<synchronous>, transform_indices = @transform_3, window_bounds = array<i64: 1, 8>}, {transform_indices = @transform_4, window_bounds = array<i64: 1, 384, 8>}]} {
    %c0 = arith.constant 0 : index
    %c0_0 = arith.constant 0 : index
    %c0_1 = arith.constant 0 : index
    %0 = vector.load %arg2[%c0, %c0_0, %c0_1] : memref<1x384x4xbf16, #tpu.memory_space<vmem>>, vector<1x384x4xbf16>
    %1 = vector.shape_cast %0 : vector<1x384x4xbf16> to vector<384x4xbf16>
    %c0_2 = arith.constant 0 : index
    %c0_3 = arith.constant 0 : index
    %c0_4 = arith.constant 0 : index
    %2 = vector.load %arg3[%c0_2, %c0_3, %c0_4] : memref<1x96x4xbf16, #tpu.memory_space<vmem>>, vector<1x96x4xbf16>
    %3 = vector.shape_cast %2 : vector<1x96x4xbf16> to vector<96x4xbf16>
    %4 = tpu.concatenate %1, %3 in 0 : vector<384x4xbf16>, vector<96x4xbf16> -> vector<480x4xbf16>
    %5 = vector.extract_strided_slice %4 {offsets = [0, 0], sizes = [384, 4], strides = [1, 1]} : vector<480x4xbf16> to vector<384x4xbf16>
    %6 = vector.extract_strided_slice %4 {offsets = [1, 0], sizes = [384, 4], strides = [1, 1]} : vector<480x4xbf16> to vector<384x4xbf16>
    %7 = vector.extract_strided_slice %4 {offsets = [2, 0], sizes = [384, 4], strides = [1, 1]} : vector<480x4xbf16> to vector<384x4xbf16>
    %8 = tpu.concatenate %5, %6, %7 in 1 : vector<384x4xbf16>, vector<384x4xbf16>, vector<384x4xbf16> -> vector<384x12xbf16>
    %c0_5 = arith.constant 0 : index
    %c0_6 = arith.constant 0 : index
    %c0_7 = arith.constant 0 : index
    %9 = vector.load %arg4[%c0_5, %c0_6, %c0_7] : memref<3x12x8xbf16, #tpu.memory_space<vmem>>, vector<1x12x8xbf16>
    %10 = vector.shape_cast %9 : vector<1x12x8xbf16> to vector<12x8xbf16>
    %cst = arith.constant dense<0.000000e+00> : vector<384x8xf32>
    %11 = tpu.matmul %8, %10, %cst {dimension_numbers = #tpu.dot_dimension_numbers<[1], [0], [0], [1], [0, 0, 1, 1], [], []>} : vector<384x12xbf16>, vector<12x8xbf16>, vector<384x8xf32> -> vector<384x8xf32>
    %12 = vector.extract_strided_slice %4 {offsets = [24, 0], sizes = [384, 4], strides = [1, 1]} : vector<480x4xbf16> to vector<384x4xbf16>
    %13 = vector.extract_strided_slice %4 {offsets = [25, 0], sizes = [384, 4], strides = [1, 1]} : vector<480x4xbf16> to vector<384x4xbf16>
    %14 = vector.extract_strided_slice %4 {offsets = [26, 0], sizes = [384, 4], strides = [1, 1]} : vector<480x4xbf16> to vector<384x4xbf16>
    %15 = tpu.concatenate %12, %13, %14 in 1 : vector<384x4xbf16>, vector<384x4xbf16>, vector<384x4xbf16> -> vector<384x12xbf16>
    %c1 = arith.constant 1 : index
    %c0_8 = arith.constant 0 : index
    %c0_9 = arith.constant 0 : index
    %16 = vector.load %arg4[%c1, %c0_8, %c0_9] : memref<3x12x8xbf16, #tpu.memory_space<vmem>>, vector<1x12x8xbf16>
    %17 = vector.shape_cast %16 : vector<1x12x8xbf16> to vector<12x8xbf16>
    %cst_10 = arith.constant dense<0.000000e+00> : vector<384x8xf32>
    %18 = tpu.matmul %15, %17, %cst_10 {dimension_numbers = #tpu.dot_dimension_numbers<[1], [0], [0], [1], [0, 0, 1, 1], [], []>} : vector<384x12xbf16>, vector<12x8xbf16>, vector<384x8xf32> -> vector<384x8xf32>
    %19 = arith.addf %11, %18 : vector<384x8xf32>
    %20 = vector.extract_strided_slice %4 {offsets = [48, 0], sizes = [384, 4], strides = [1, 1]} : vector<480x4xbf16> to vector<384x4xbf16>
    %21 = vector.extract_strided_slice %4 {offsets = [49, 0], sizes = [384, 4], strides = [1, 1]} : vector<480x4xbf16> to vector<384x4xbf16>
    %22 = vector.extract_strided_slice %4 {offsets = [50, 0], sizes = [384, 4], strides = [1, 1]} : vector<480x4xbf16> to vector<384x4xbf16>
    %23 = tpu.concatenate %20, %21, %22 in 1 : vector<384x4xbf16>, vector<384x4xbf16>, vector<384x4xbf16> -> vector<384x12xbf16>
    %c2 = arith.constant 2 : index
    %c0_11 = arith.constant 0 : index
    %c0_12 = arith.constant 0 : index
    %24 = vector.load %arg4[%c2, %c0_11, %c0_12] : memref<3x12x8xbf16, #tpu.memory_space<vmem>>, vector<1x12x8xbf16>
    %25 = vector.shape_cast %24 : vector<1x12x8xbf16> to vector<12x8xbf16>
    %cst_13 = arith.constant dense<0.000000e+00> : vector<384x8xf32>
    %26 = tpu.matmul %23, %25, %cst_13 {dimension_numbers = #tpu.dot_dimension_numbers<[1], [0], [0], [1], [0, 0, 1, 1], [], []>} : vector<384x12xbf16>, vector<12x8xbf16>, vector<384x8xf32> -> vector<384x8xf32>
    %27 = arith.addf %19, %26 : vector<384x8xf32>
    %c0_14 = arith.constant 0 : index
    %c0_15 = arith.constant 0 : index
    %28 = vector.load %arg5[%c0_14, %c0_15] : memref<1x8xf32, #tpu.memory_space<vmem>>, vector<1x8xf32>
    %29 = vector.broadcast %28 : vector<1x8xf32> to vector<384x8xf32>
    %30 = arith.addf %27, %29 : vector<384x8xf32>
    %cst_16 = arith.constant 0.000000e+00 : f32
    %31 = vector.broadcast %cst_16 : f32 to vector<384x8xf32>
    %32 = arith.maximumf %30, %31 : vector<384x8xf32>
    %c0_17 = arith.constant 0 : index
    %c0_18 = arith.constant 0 : index
    %c0_19 = arith.constant 0 : index
    %33 = vector.load %arg6[%c0_17, %c0_18, %c0_19] : memref<1x384x8xf32, #tpu.memory_space<vmem>>, vector<1x384x8xf32>
    %34 = vector.shape_cast %33 : vector<1x384x8xf32> to vector<384x8xf32>
    %35 = vector.shape_cast %32 : vector<384x8xf32> to vector<1x384x8xf32>
    tpu.vector_store %arg6[%c0_17, %c0_18, %c0_19], %35 {strides = array<i32>} : memref<1x384x8xf32, #tpu.memory_space<vmem>>, vector<1x384x8xf32>,
    return
  }
  func.func @transform_0(%arg0: i32, %arg1: i32) -> (i32, i32, i32) {
    %c0_i32 = arith.constant 0 : i32
    %c0_i32_0 = arith.constant 0 : i32
    return %arg0, %arg1, %c0_i32 : i32, i32, i32
  }
  func.func @transform_1(%arg0: i32, %arg1: i32) -> (i32, i32, i32) {
    %c1_i32 = arith.constant 1 : i32
    %0 = arith.addi %arg1, %c1_i32 : i32
    %c4_i32 = arith.constant 4 : i32
    %1 = arith.muli %0, %c4_i32 : i32
    %c0_i32 = arith.constant 0 : i32
    %c0_i32_0 = arith.constant 0 : i32
    return %arg0, %1, %c0_i32 : i32, i32, i32
  }
  func.func @transform_2(%arg0: i32, %arg1: i32) -> (i32, i32, i32) {
    %c0_i32 = arith.constant 0 : i32
    %c0_i32_0 = arith.constant 0 : i32
    %c0_i32_1 = arith.constant 0 : i32
    %c0_i32_2 = arith.constant 0 : i32
    return %c0_i32, %c0_i32_0, %c0_i32_1 : i32, i32, i32
  }
  func.func @transform_3(%arg0: i32, %arg1: i32) -> (i32, i32) {
    %c0_i32 = arith.constant 0 : i32
    %c0_i32_0 = arith.constant 0 : i32
    %c0_i32_1 = arith.constant 0 : i32
    return %c0_i32, %c0_i32_0 : i32, i32
  }
  func.func @transform_4(%arg0: i32, %arg1: i32) -> (i32, i32, i32) {
    %c0_i32 = arith.constant 0 : i32
    %c0_i32_0 = arith.constant 0 : i32
    return %arg0, %arg1, %c0_i32 : i32, i32, i32
  }
}

</mosaic_0001>

<bundles_post_ra>
// kernel: tpu_custom_call.1
= control target key start
LH: loop header
LB: loop body
LE: loop exit
PB: predicated region body
PF: predicated region fallthrough
CT: control target
= control target key end

     0   :  { %s2684_s15 = smov 0   ;;  %s2686_s16 = smov 0   ;;  %s3646_s0 = inlined_call_operand.vmem [shape: bf16[2,480,4], index: 0, kind: input, shape index: {}]   ;;  %s3647_s1 = inlined_call_operand.vmem [shape: bf16[2,480,4], index: 1, kind: input, shape index: {}]   ;;  %s3648_s2 = inlined_call_operand.vmem [shape: bf16[3,12,8], index: 2, kind: input, shape index: {}]   ;;  %s3649_s3 = inlined_call_operand.vmem [shape: f32[1,8], index: 3, kind: input, shape index: {}]   ;;  %s3650_s4 = inlined_call_operand.vmem [shape: f32[2,384,8], index: 4, kind: output, shape index: {}]  }
   0x1   :  { %s2688_s17 = smov 0  }
   0x2 LB: > { %s26_s18 = sadd.s32 1, %s2651_s16  ;;  %p2225_p0 = scmp.ge.s32.totalorder %s2655_s17, 1  ;;  %s2655_s17 = sphi %s2688_s17, %s14_s17   ;;  %s2651_s16 = sphi %s2686_s16, %s3652_s16   ;;  %s2647_s15 = sphi %s2684_s15, %s3651_s15  }
   0x3   : > { %p28_p1 = scmp.ge.s32.totalorder %s26_s18, 2  ;;  %p216_p2 = scmp.lt.s32.totalorder %s2655_s17, 3 }
   0x5   : > { %s3654_s18 = smov (%p28_p1, %s26_s18), 0  ;;  %p217_p3 = pnand %p2225_p0, %p216_p2 }
   0x6   : > { %p270_p4 = scmp.lt.s32.totalorder (!%p217_p3), %s2647_s15, 1  ;;  %s2657_s23 = smov (!%p217_p3), 8  }
   0x7   : > { %220 = sbr.rel (%p217_p3) target bundleno = 539 (0x21b), region = 36  ;;  %s2658_s24 = smov (!%p217_p3), 4  }
   0xc   : > { %s3656_s15 = smov (!%p270_p4, %s2647_s15), 1  ;;  %vm749_vm0 = vcmask 1046528   ;;  %vm504_vm1 = vsmask.f32 7424  ;;  %vm1132_vm2 = vcmask 1045504   ;;  %vm847_vm3 = vcmask 31744  }
   0xd   : > { %s2572_s19 = smul.u32 240, %s3656_s15  ;;  %vm896_vm4 = vcmask 64512   ;;  %vm1004_vm5 = vcmask 1043456   ;;  %vm1059_vm6 = vcmask 97280  }
   0xe   : > { %s2574_s9 = smul.u32 384, %s3656_s15 }
   0xf   : > { %s2710_s22 = scalar_lea.vmem %s3646_s0, %s2572_s19  ;;  %s2340_s25 = sadd.s32 192, %s2572_s19 }
  0x10   : > { %v2713_v0 = vld [vmem:[%s2710_s22 + $0x70] sm:$0xff]   ;;  %v2716_v1 = vld [vmem:[%s2710_s22 + $0x78] sm:$0xff]   ;;  %v2719_v2 = vld [vmem:[%s2710_s22 + $0x68] sm:$0xff]   ;;  %s2825_s28 = scalar_lea.vmem %s3647_s1, %s2340_s25  ;;  %s3448_s14 = scalar_lea.vmem %s3650_s4, %s2574_s9 }
  0x11   : > { %v777_v3 = vrot.slane %v2713_v0, 1  ;;  %v779_v4 = vrot.slane %v2716_v1, 1  ;;  %v775_v5 = vrot.slane %v2719_v2, 1  ;;  %v2725_v6 = vld [vmem:[%s2710_s22 + $0x80] sm:$0xff]   ;;  %v609_v7 = vshll.u32 %v2719_v2, 16  ;;  %v2731_v10 = vld [vmem:[%s2710_s22 + $0x8] sm:$0xff]  }
  0x12   : > { %v613_v8 = vshrl.u32 %v2719_v2, 16  ;;  %v617_v9 = vshll.u32 %v2713_v0, 16  ;;  %v621_v12 = vshrl.u32 %v2713_v0, 16  ;;  %v625_v13 = vshll.u32 %v2716_v1, 16  ;;  %v2744_v18 = vld [vmem:[%s2710_s22 + $0x10] sm:$0xff]   ;;  %v2754_v25 = vld [vmem:[%s2710_s22 + $0x18] sm:$0xff]  }
  0x13   : > { %v780_v11 = vsel %vm749_vm0, %v777_v3, %v779_v4  ;;  %v778_v14 = vsel %vm749_vm0, %v775_v5, %v777_v3  ;;  %v781_v15 = vrot.slane %v2725_v6, 1  ;;  %v2741_v16 = vrot.slane %v609_v7, 1  ;;  %v2767_v34 = vld [vmem:[%s2710_s22 + $0x20] sm:$0xff]   ;;  %v2773_v39 = vld [vmem:[%s2710_s22 + $0x88] sm:$0xff]   ;;  %v2787_v52 = vld [vmem:[%s2710_s22 + $0x90] sm:$0xff]  }
  0x14   : > { %827 = vrot.lane.b32.xlu0 %v780_v11, %s2657_s23  ;;  %v619_v17 = vrot.slane %v617_v9, 1  ;;  %825 = vrot.lane.b32.xlu1 %v778_v14, %s2657_s23  ;;  %v627_v19 = vrot.slane %v625_v13, 1  ;;  %v751_v20 = vrot.slane %v2731_v10, 1  ;;  %v753_v24 = vrot.slane %v2744_v18, 1  ;;  %v2799_v61 = vld [vmem:[%s2710_s22 + $0x28] sm:$0xff]   ;;  %v2808_v11 = vld [vmem:[%s2710_s22 + $0x30] sm:$0xff]  }
  0x15   : > { %v782_v21 = vsel %vm749_vm0, %v779_v4, %v781_v15  ;;  %v615_v22 = vor.u32 %v613_v8, %v2741_v16  ;;  %v521_v26 = vshll.u32 %v2744_v18, 16  ;;  %v525_v27 = vshrl.u32 %v2744_v18, 16 }
  0x16   : > { %v623_v23 = vor.u32 %v621_v12, %v619_v17  ;;  %v629_v28 = vshrl.u32 %v2716_v1, 16  ;;  %v633_v29 = vshll.u32 %v2725_v6, 16  ;;  %v754_v32 = vsel %vm749_vm0, %v751_v20, %v753_v24 }
  0x17   : > { %v620_v30 = vsel %vm504_vm1, %v615_v22, %v619_v17  ;;  %v529_v33 = vshll.u32 %v2754_v25, 16  ;;  %v523_v35 = vrot.slane %v521_v26, 1  ;;  %v533_v38 = vshrl.u32 %v2754_v25, 16 }
  0x18   : > { %v628_v31 = vsel %vm504_vm1, %v623_v23, %v627_v19  ;;  %829 = vrot.lane.b32.xlu1 %v782_v21, %s2657_s23  ;;  %727 = vrot.lane.b32.xlu0 %v620_v30, %s2658_s24  ;;  %v631_v36 = vor.u32 %v629_v28, %v627_v19  ;;  %v635_v37 = vrot.slane %v633_v29, 1  ;;  %v537_v41 = vshll.u32 %v2767_v34, 16  ;;  %v2820_v23 = vld [vmem:[%s2710_s22 + $0x98] sm:$0xff]  }
  0x19   : > { %v531_v40 = vrot.slane %v529_v33, 1  ;;  %v513_v42 = vshll.u32 %v2731_v10, 16  ;;  %v517_v43 = vshrl.u32 %v2731_v10, 16  ;;  %v527_v44 = vor.u32 %v525_v27, %v523_v35 }
  0x1a   : > { %v539_v47 = vrot.slane %v537_v41, 1  ;;  %v636_v49 = vsel %vm504_vm1, %v631_v36, %v635_v37  ;;  %v641_v51 = vshll.u32 %v2773_v39, 16  ;;  %v755_v53 = vrot.slane %v2754_v25, 1  ;;  %v2845_v36 = vld [vmem:[%s2710_s22 + $0x38] sm:$0xff]  }
  0x1b   : > { %v2778_v45 = vrot.slane %v513_v42, 1  ;;  %v535_v46 = vor.u32 %v533_v38, %v531_v40  ;;  %v532_v48 = vsel %vm504_vm1, %v527_v44, %v531_v40  ;;  %v757_v55 = vrot.slane %v2767_v34, 1  ;;  %v2851_v42 = vld [vmem:[%s2710_s22 + $0x60] sm:$0xff]  }
  0x1c   : > { %729 = vrot.lane.b32.xlu0 %v628_v31, %s2658_s24  ;;  %801 = vrot.lane.b32.xlu1 %v754_v32, %s2657_s23  ;;  %v637_v56 = vshrl.u32 %v2725_v6, 16  ;;  %v643_v58 = vrot.slane %v641_v51, 1  ;;  %v645_v59 = vshrl.u32 %v2773_v39, 16  ;;  %v649_v60 = vshll.u32 %v2787_v52, 16  ;;  %v2836_v31 = vld [vmem:[%s2710_s22 + $0xa0] sm:$0xff]  }
  0x1d   : > { %v519_v50 = vor.u32 %v517_v43, %v2778_v45  ;;  %v540_v54 = vsel %vm504_vm1, %v535_v46, %v539_v47  ;;  %v756_v62 = vsel %vm749_vm0, %v753_v24, %v755_v53  ;;  %v758_v63 = vsel %vm749_vm0, %v755_v53, %v757_v55  ;;  %v2862_v51 = vld [vmem:[%s2710_s22 + $0x40] sm:$0xff]  }
  0x1e   : > { %v639_v3 = vor.u32 %v637_v56, %v635_v37  ;;  %v647_v4 = vor.u32 %v645_v59, %v643_v58  ;;  %v651_v7 = vrot.slane %v649_v60, 1  ;;  %v541_v8 = vshrl.u32 %v2767_v34, 16 }
  0x1f   : > { %v524_v57 = vsel %vm504_vm1, %v519_v50, %v523_v35  ;;  %v545_v9 = vshll.u32 %v2799_v61, 16  ;;  %v783_v13 = vrot.slane %v2773_v39, 1  ;;  %v549_v14 = vshrl.u32 %v2799_v61, 16 }
  0x20   : > { %705 = vrot.lane.b32.xlu0 %v532_v48, %s2658_s24  ;;  %731 = vrot.lane.b32.xlu1 %v636_v49, %s2658_s24  ;;  %v644_v12 = vsel %vm504_vm1, %v639_v3, %v643_v58  ;;  %v652_v17 = vsel %vm504_vm1, %v647_v4, %v651_v7  ;;  %v543_v19 = vor.u32 %v541_v8, %v539_v47  ;;  %v553_v22 = vshll.u32 %v2808_v11, 16  ;;  %v2628_v3 = vld [vmem:[%s3648_s2 + $0x8] sm:$0x3f]  }
  0x21   : > { %v547_v21 = vrot.slane %v545_v9, 1  ;;  %v784_v24 = vsel %vm749_vm0, %v781_v15, %v783_v13  ;;  %v785_v26 = vrot.slane %v2787_v52, 1  ;;  %v657_v30 = vshll.u32 %v2820_v23, 16  ;;  %2569 = vmatprep.subr.msk.bf16.mxu1 %vm1132_vm2, %v2628_v3  ;;  %2568 = vmatprep.subr.msk.bf16.mxu0 %vm1132_vm2, %v2628_v3 }
  0x22   : > { %v555_v29 = vrot.slane %v553_v22, 1  ;;  %v759_v33 = vrot.slane %v2799_v61, 1  ;;  %v761_v15 = vrot.slane %v2808_v11, 1  ;;  %v653_v35 = vshrl.u32 %v2787_v52, 16  ;;  %v2893_v22 = vld [vmem:[%s2710_s22 + $0xb0] sm:$0xff]  }
  0x23   : > { %v548_v27 = vsel %vm504_vm1, %v543_v19, %v547_v21  ;;  %v551_v28 = vor.u32 %v549_v14, %v547_v21  ;;  %v786_v32 = vsel %vm749_vm0, %v783_v13, %v785_v26  ;;  %v659_v38 = vrot.slane %v657_v30, 1 }
  0x24   : > { %707 = vrot.lane.b32.xlu0 %v540_v54, %s2658_s24  ;;  %703 = vrot.lane.b32.xlu1 %v524_v57, %s2658_s24  ;;  %v661_v40 = vshrl.u32 %v2820_v23, 16  ;;  %v665_v41 = vshll.u32 %v2836_v31, 16  ;;  %v760_v43 = vsel %vm749_vm0, %v757_v55, %v759_v33  ;;  %v557_v44 = vshrl.u32 %v2808_v11, 16  ;;  %v2866_v54 = vld [vmem:[%s2710_s22] sm:$0xff]  }
  0x25   : > { %v556_v37 = vsel %vm504_vm1, %v551_v28, %v555_v29  ;;  %v561_v46 = vshll.u32 %v2845_v36, 16  ;;  %v762_v47 = vsel %vm749_vm0, %v759_v33, %v761_v15  ;;  %v655_v48 = vor.u32 %v653_v35, %v651_v7 }
  0x26   : > { %v663_v49 = vor.u32 %v661_v40, %v659_v38  ;;  %v667_v50 = vrot.slane %v665_v41, 1  ;;  %v601_v53 = vshll.u32 %v2851_v42, 16  ;;  %v787_v55 = vrot.slane %v2820_v23, 1 }
  0x27   : > { %v559_v56 = vor.u32 %v557_v44, %v555_v29  ;;  %v563_v57 = vrot.slane %v561_v46, 1  ;;  %v565_v58 = vshrl.u32 %v2845_v36, 16  ;;  %v660_v59 = vsel %vm504_vm1, %v655_v48, %v659_v38  ;;  %v2903_v29 = vld [vmem:[%s2710_s22 + $0x48] sm:$0xff]  }
  0x28   : > { %803 = vrot.lane.b32.xlu0 %v756_v62, %s2657_s23  ;;  %805 = vrot.lane.b32.xlu1 %v758_v63, %s2657_s23  ;;  %v668_v60 = vsel %vm504_vm1, %v663_v49, %v667_v50  ;;  %v569_v62 = vshll.u32 %v2862_v51, 16  ;;  %v2876_v63 = vld [vmem:[%s2710_s22 + $0xa8] sm:$0xff]   ;;  %v605_v4 = vshrl.u32 %v2851_v42, 16  ;;  %v789_v7 = vrot.slane %v2836_v31, 1  ;;  %v2933_v49 = vld [vmem:[%s2710_s22 + $0x50] sm:$0xff]  }
  0x29   : > { %v2883_v8 = vrot.slane %v601_v53, 1  ;;  %v506_v9 = vshrl.u32 %v2866_v54, 16  ;;  %v788_v13 = vsel %vm749_vm0, %v785_v26, %v787_v55  ;;  %v564_v14 = vsel %vm504_vm1, %v559_v56, %v563_v57 }
  0x2a   : > { %v571_v19 = vrot.slane %v569_v62, 1  ;;  %v673_v21 = vshll.u32 %v2876_v63, 16  ;;  %v1134_v28 = vsel %vm1132_vm2, %v2628_v3, 0  ;;  %v790_v26 = vsel %vm749_vm0, %v787_v55, %v789_v7 }
  0x2b   : > { %2567 = vmatpush3.bf16.msra.mxu1 %v1134_v28  ;;  %2417 = vmatpush3.bf16.msra.mxu0 %v1134_v28  ;;  %v763_v33 = vrot.slane %v2845_v36, 1  ;;  %v765_v35 = vrot.slane %v2862_v51, 1  ;;  %v677_v38 = vshrl.u32 %v2876_v63, 16  ;;  %v577_v48 = vshll.u32 %v2903_v29, 16 }
  0x2c   : > { %733 = vrot.lane.b32.xlu0 %v644_v12, %s2658_s24  ;;  %735 = vrot.lane.b32.xlu1 %v652_v17, %s2658_s24  ;;  %v508_v12 = vshll.u32 %v2866_v54, 16  ;;  %v567_v17 = vor.u32 %v565_v58, %v563_v57  ;;  %v675_v41 = vrot.slane %v673_v21, 1  ;;  %v581_v3 = vshrl.u32 %v2903_v29, 16  ;;  %v2964_v21 = vld [vmem:[%s2825_s28 + $0x18] sm:$0xff]  }
  0x2d   : > { %v764_v46 = vsel %vm749_vm0, %v761_v15, %v763_v33  ;;  %v766_v55 = vsel %vm749_vm0, %v763_v33, %v765_v35  ;;  %v579_v62 = vrot.slane %v577_v48, 1 }
  0x2e   : > { %v572_v40 = vsel %vm504_vm1, %v567_v17, %v571_v19  ;;  %v679_v56 = vor.u32 %v677_v38, %v675_v41  ;;  %v1651_v38 = vshll.u32 %v2964_v21, 16 }
  0x30   : > { %831 = vrot.lane.b32.xlu0 %v784_v24, %s2657_s23  ;;  %709 = vrot.lane.b32.xlu1 %v548_v27, %s2658_s24  ;;  %v607_v24 = vor.u32 %v605_v4, %v2883_v8  ;;  %v510_v27 = vrot.slane %v508_v12, 1  ;;  %v2956_v12 = vld [vmem:[%s2710_s22 + $0xb8] sm:$0xff]  }
  0x32   : > { %v2907_v30 = vsel %vm504_vm1, %v607_v24, %v2741_v16  ;;  %v2629_v16 = vld [vmem:[%s3648_s2] sm:$0x3f]  }
  0x33   : > { %2570 = vmatprep.subr.msk.bf16.mxu1 %vm1132_vm2, %v2629_v16  ;;  %v2936_v53 = vsel %vm1132_vm2, %v2629_v16, 0 }
  0x34   : > { %833 = vrot.lane.b32.xlu0 %v786_v32, %s2657_s23  ;;  %711 = vrot.lane.b32.xlu1 %v556_v37, %s2658_s24  ;;  %v511_v32 = vor.u32 %v510_v27, %v506_v9  ;;  %v669_v37 = vshrl.u32 %v2836_v31, 16  ;;  %v583_v27 = vor.u32 %v581_v3, %v579_v62 }
  0x36   : > { %v2922_v44 = vsel %vm504_vm1, %v511_v32, %v2778_v45  ;;  %v2630_v45 = vld [vmem:[%s3648_s2 + $0x10] sm:$0x3f]   ;;  %v671_v15 = vor.u32 %v669_v37, %v667_v50  ;;  %v585_v50 = vshll.u32 %v2933_v49, 16  ;;  %v2974_v32 = vld [vmem:[%s2825_s28] sm:$0xff]  }
  0x37   : > { %2571 = vmatprep.subr.msk.bf16.mxu0 %vm1132_vm2, %v2630_v45  ;;  %v2946_v58 = vsel %vm1132_vm2, %v2630_v45, 0 }
  0x38   : > { %807 = vrot.lane.b32.xlu0 %v760_v43, %s2657_s23  ;;  %809 = vrot.lane.b32.xlu1 %v762_v47, %s2657_s23  ;;  %v681_v43 = vshll.u32 %v2893_v22, 16  ;;  %v573_v47 = vshrl.u32 %v2862_v51, 16  ;;  %v676_v4 = vsel %vm504_vm1, %v671_v15, %v675_v41  ;;  %v587_v28 = vrot.slane %v585_v50, 1  ;;  %v2991_v15 = vld [vmem:[%s2710_s22 + $0x58] sm:$0xff]  }
  0x39   : > { %v767_v41 = vrot.slane %v2903_v29, 1 }
  0x3a   : > { %v683_v57 = vrot.slane %v681_v43, 1  ;;  %v769_v43 = vrot.slane %v2933_v49, 1  ;;  %v588_v48 = vsel %vm504_vm1, %v583_v27, %v587_v28 }
  0x3c   : > { %737 = vrot.lane.b32.xlu0 %v660_v59, %s2658_s24  ;;  %739 = vrot.lane.b32.xlu1 %v668_v60, %s2658_s24  ;;  %v791_v59 = vrot.slane %v2876_v63, 1  ;;  %v575_v60 = vor.u32 %v573_v47, %v571_v19  ;;  %v684_v9 = vsel %vm504_vm1, %v679_v56, %v683_v57  ;;  %v693_v47 = vshrl.u32 %v2956_v12, 16 }
  0x3e   : > { %v792_v19 = vsel %vm749_vm0, %v789_v7, %v791_v59  ;;  %v580_v24 = vsel %vm504_vm1, %v575_v60, %v579_v62  ;;  %v1653_v7 = vrot.slane %v1651_v38, 1  ;;  %v770_v60 = vsel %vm749_vm0, %v767_v41, %v769_v43 }
  0x40   : > { %835 = vrot.lane.b32.xlu0 %v788_v13, %s2657_s23  ;;  %713 = vrot.lane.b32.xlu1 %v564_v14, %s2658_s24  ;;  %v2959_v13 = vld [vmem:[%s2825_s28 + $0x10] sm:$0xff]   ;;  %v793_v14 = vrot.slane %v2893_v22, 1 }
  0x41   : > { %v1643_v17 = vshll.u32 %v2959_v13, 16  ;;  %v1647_v37 = vshrl.u32 %v2959_v13, 16 }
  0x42   : > { %v794_v16 = vsel %vm749_vm0, %v791_v59, %v793_v14  ;;  %v768_v59 = vsel %vm749_vm0, %v765_v35, %v767_v41 }
  0x43   : > { %v2976_v33 = vrot.slane %v1643_v17, 1  ;;  %v795_v17 = vrot.slane %v2956_v12, 1 }
  0x44   : > { %837 = vrot.lane.b32.xlu0 %v790_v26, %s2657_s23  ;;  %715 = vrot.lane.b32.xlu1 %v572_v40, %s2658_s24  ;;  %v689_v26 = vshll.u32 %v2956_v12, 16 }
  0x45   : > { %v1649_v40 = vor.u32 %v1647_v37, %v2976_v33  ;;  %v3012_v37 = vld [vmem:[%s2825_s28 + $0x8] sm:$0xff]   ;;  %v796_v38 = vsel %vm749_vm0, %v793_v14, %v795_v17  ;;  %v947_v14 = vshrl.u32 %v2974_v32, 16 }
  0x46   : > { %v691_v45 = vrot.slane %v689_v26, 1  ;;  %v797_v26 = vrot.slane %v2974_v32, 1 }
  0x47   : > { %v1654_v56 = vsel %vm504_vm1, %v1649_v40, %v1653_v7  ;;  %v951_v7 = vshll.u32 %v3012_v37, 16 }
  0x48   : > { %811 = vrot.lane.b32.xlu0 %v764_v46, %s2657_s23  ;;  %813 = vrot.lane.b32.xlu1 %v766_v55, %s2657_s23  ;;  %v685_v46 = vshrl.u32 %v2893_v22, 16  ;;  %v697_v55 = vshll.u32 %v2974_v32, 16  ;;  %v695_v3 = vor.u32 %v693_v47, %v691_v45  ;;  %v773_v47 = vrot.slane %v2851_v42, 1 }
  0x4a   : > { %v687_v62 = vor.u32 %v685_v46, %v683_v57  ;;  %v699_v50 = vrot.slane %v697_v55, 1  ;;  %v771_v46 = vrot.slane %v2991_v15, 1 }
  0x4c   : > { %741 = vrot.lane.b32.xlu0 %v676_v4, %s2658_s24  ;;  %743 = vrot.lane.b32.xlu1 %v684_v9, %s2658_s24  ;;  %v589_v4 = vshrl.u32 %v2933_v49, 16  ;;  %v593_v9 = vshll.u32 %v2991_v15, 16  ;;  %v692_v35 = vsel %vm504_vm1, %v687_v62, %v691_v45  ;;  %v955_v45 = vshrl.u32 %v3012_v37, 16 }
  0x4d   : > { %v772_v55 = vsel %vm749_vm0, %v769_v43, %v771_v46  ;;  %v776_v43 = vsel %vm749_vm0, %v773_v47, %v775_v5  ;;  %v1659_v5 = vrot.slane %v2959_v13, 1 }
  0x4e   : > { %v591_v57 = vor.u32 %v589_v4, %v587_v28  ;;  %v595_v27 = vrot.slane %v593_v9, 1  ;;  %v798_v28 = vsel %vm749_vm0, %v795_v17, %v797_v26  ;;  %v1661_v17 = vrot.slane %v2964_v21, 1 }
  0x50   : > { %839 = vrot.lane.b32.xlu0 %v792_v19, %s2657_s23  ;;  %717 = vrot.lane.b32.xlu1 %v580_v24, %s2658_s24  ;;  %v597_v19 = vshrl.u32 %v2991_v15, 16  ;;  %v700_v24 = vsel %vm504_vm1, %v695_v3, %v699_v50  ;;  %v962_v3 = vrot.slane %v3012_v37, 1 }
  0x52   : > { %v599_v40 = vor.u32 %v597_v19, %v595_v27  ;;  %v963_v4 = vsel %vm749_vm0, %v797_v26, %v962_v3  ;;  %v1660_v19 = vsel %vm749_vm0, %v962_v3, %v1659_v5 }
  0x54   : > { %841 = vrot.lane.b32.xlu0 %v794_v16, %s2657_s23  ;;  %719 = vrot.lane.b32.xlu1 %v588_v48, %s2658_s24  ;;  %v596_v16 = vsel %vm504_vm1, %v591_v57, %v595_v27  ;;  %v604_v41 = vsel %vm504_vm1, %v599_v40, %v2883_v8  ;;  %v953_v48 = vrot.slane %v951_v7, 1 }
  0x56   : > { %v957_v8 = vor.u32 %v955_v45, %v953_v48 }
  0x58   : > { %815 = vrot.lane.b32.xlu0 %v768_v59, %s2657_s23  ;;  %817 = vrot.lane.b32.xlu1 %v770_v60, %s2657_s23  ;;  %v774_v59 = vsel %vm749_vm0, %v771_v46, %v773_v47  ;;  %v949_v60 = vor.u32 %v947_v14, %v699_v50  ;;  %v750_v50 = vrot.slane %v2866_v54, 1 }
  0x5a   : > { %v954_v62 = vsel %vm504_vm1, %v949_v60, %v953_v48  ;;  %v752_v9 = vsel %vm749_vm0, %v750_v50, %v751_v20  ;;  %v1662_v20 = vsel %vm749_vm0, %v1659_v5, %v1661_v17 }
  0x5c   : > { %745 = vrot.lane.b32.xlu0 %v692_v35, %s2658_s24  ;;  %747 = vrot.lane.b32.xlu1 %v700_v24, %s2658_s24 }
  0x60   : > { %843 = vrot.lane.b32.xlu0 %v796_v38, %s2657_s23  ;;  %721 = vrot.lane.b32.xlu1 %v596_v16, %s2658_s24 }
  0x64   : > { %845 = vrot.lane.b32.xlu0 %v798_v28, %s2657_s23  ;;  %723 = vrot.lane.b32.xlu1 %v604_v41, %s2658_s24 }
  0x68   : > { %819 = vrot.lane.b32.xlu0 %v772_v55, %s2657_s23  ;;  %821 = vrot.lane.b32.xlu1 %v774_v59, %s2657_s23 }
  0x6c   : > { %958 = vrot.lane.b32.xlu0 %v954_v62, %s2658_s24  ;;  %960 = vrot.lane.b32.xlu1 %v957_v8, %s2658_s24 }
  0x70   : > { %964 = vrot.lane.b32.xlu0 %v963_v4, %s2657_s23  ;;  %725 = vrot.lane.b32.xlu1 %v2907_v30, %s2658_s24  ;;  %v1646_v30 = vsel %vm504_vm1, %v957_v8, %v2976_v33 }
  0x74   : > { %966 = vrot.lane.b32.xlu0 %v962_v3, %s2657_s23  ;;  %823 = vrot.lane.b32.xlu1 %v776_v43, %s2657_s23 }
  0x78   : > { %701 = vrot.lane.b32.xlu0 %v2922_v44, %s2658_s24  ;;  %799 = vrot.lane.b32.xlu1 %v752_v9, %s2657_s23 }
  0x7c   : > { %1655 = vrot.lane.b32.xlu0 %v1646_v30, %s2658_s24  ;;  %1657 = vrot.lane.b32.xlu1 %v1654_v56, %s2658_s24 }
  0x80   : > { %1663 = vrot.lane.b32.xlu0 %v1660_v19, %s2657_s23  ;;  %1665 = vrot.lane.b32.xlu1 %v1662_v20, %s2657_s23 }
  0x86   : > { %v828_v44 = vpop.permute.xlu0 %827  ;;  %v826_v35 = vpop.permute.xlu1 %825 }
  0x8a   : > { %v830_v33 = vpop.permute.xlu1 %829  ;;  %v728_v24 = vpop.permute.xlu0 %727 }
  0x8b   : > { %v875_v21 = vsel %vm847_vm3, %v2719_v2, %v728_v24 }
  0x8c   : > { %v3065_v57 = vsel %vm896_vm4, %v875_v21, %v826_v35 }
  0x8d   : > { %v1028_v16 = vrot.slane %v3065_v57, 4 }
  0x8e   : > { %v730_v56 = vpop.permute.xlu0 %729  ;;  %v802_v27 = vpop.permute.xlu1 %801 }
  0x8f   : > { %v877_v26 = vsel %vm847_vm3, %v2713_v0, %v730_v56 }
  0x90   : > { %v3070_v38 = vsel %vm896_vm4, %v877_v26, %v828_v44 }
  0x91   : > { %v1030_v40 = vrot.slane %v3070_v38, 4 }
  0x92   : > { %v706_v28 = vpop.permute.xlu0 %705  ;;  %v732_v7 = vpop.permute.xlu1 %731 }
  0x93   : > { %v879_v2 = vsel %vm847_vm3, %v2716_v1, %v732_v7  ;;  %v1031_v41 = vsel %vm1004_vm5, %v1028_v16, %v1030_v40  ;;  %v853_v55 = vsel %vm847_vm3, %v2744_v18, %v706_v28 }
  0x94   : > { %v3080_v0 = vsel %vm896_vm4, %v879_v2, %v830_v33  ;;  %2442 = vmatprep.mubr.msk.bf16.mxu1 %vm1059_vm6, %v1031_v41 }
  0x95   : > { %v1032_v46 = vrot.slane %v3080_v0, 4 }
  0x96   : > { %v708_v47 = vpop.permute.xlu0 %707  ;;  %v704_v14 = vpop.permute.xlu1 %703 }
  0x97   : > { %v851_v48 = vsel %vm847_vm3, %v2731_v10, %v704_v14  ;;  %v1033_v45 = vsel %vm1004_vm5, %v1030_v40, %v1032_v46  ;;  %v855_v59 = vsel %vm847_vm3, %v2754_v25, %v708_v47 }
  0x98   : > { %2443 = vmatmul.mubr.msk.bf16.vlgmr.msra.gmra.mxu1 %vm1059_vm6, %v1033_v45  ;;  %v3089_v1 = vsel %vm896_vm4, %v851_v48, %v802_v27 }
  0x99   : > { %2467 = vmatpush3.bf16.msra.mxu1 %v2936_v53  ;;  %v1005_v53 = vrot.slane %v3089_v1, 4 }
  0x9a   : > { %v804_v60 = vpop.permute.xlu0 %803  ;;  %v806_v8 = vpop.permute.xlu1 %805 }
  0x9b   : > { %v3097_v62 = vsel %vm896_vm4, %v853_v55, %v804_v60  ;;  %v3100_v10 = vsel %vm896_vm4, %v855_v59, %v806_v8 }
  0x9c   : > { %v1006_v3 = vrot.slane %v3097_v62, 4  ;;  %v1008_v4 = vrot.slane %v3100_v10, 4 }
  0x9e   : > { %v734_v43 = vpop.permute.xlu0 %733  ;;  %v736_v50 = vpop.permute.xlu1 %735  ;;  %v1007_v18 = vsel %vm1004_vm5, %v1005_v53, %v1006_v3  ;;  %v1009_v25 = vsel %vm1004_vm5, %v1006_v3, %v1008_v4 }
  0x9f   : > { %2418 = vmatprep.mubr.msk.bf16.mxu0 %vm1059_vm6, %v1007_v18  ;;  %v881_v9 = vsel %vm847_vm3, %v2725_v6, %v734_v43  ;;  %v883_v20 = vsel %vm847_vm3, %v2773_v39, %v736_v50 }
  0xa0   : > { %2419 = vmatmul.mubr.msk.bf16.vlgmr.msra.gmra.mxu0 %vm1059_vm6, %v1009_v25 }
  0xa1   : > { %2517 = vmatpush3.bf16.msra.mxu0 %v2946_v58 }
  0xa2   : > { %v832_v30 = vpop.permute.xlu0 %831  ;;  %v710_v5 = vpop.permute.xlu1 %709 }
  0xa3   : > { %v3113_v17 = vsel %vm896_vm4, %v881_v9, %v832_v30  ;;  %v857_v58 = vsel %vm847_vm3, %v2767_v34, %v710_v5 }
  0xa4   : > { %v1034_v19 = vrot.slane %v3113_v17, 4 }
  0xa6   : > { %v834_v44 = vpop.permute.xlu0 %833  ;;  %v712_v35 = vpop.permute.xlu1 %711  ;;  %v1035_v33 = vsel %vm1004_vm5, %v1032_v46, %v1034_v19 }
  0xa7   : > { %v3120_v24 = vsel %vm896_vm4, %v883_v20, %v834_v44  ;;  %2446 = vmatprep.mubr.msk.bf16.mxu1 %vm1059_vm6, %v1035_v33  ;;  %v859_v21 = vsel %vm847_vm3, %v2799_v61, %v712_v35 }
  0xa8   : > { %v1036_v6 = vrot.slane %v3120_v24, 4 }
  0xaa   : > { %v808_v56 = vpop.permute.xlu0 %807  ;;  %v810_v27 = vpop.permute.xlu1 %809  ;;  %v1037_v39 = vsel %vm1004_vm5, %v1034_v19, %v1036_v6 }
  0xab   : > { %v3130_v26 = vsel %vm896_vm4, %v857_v58, %v808_v56  ;;  %v3133_v40 = vsel %vm896_vm4, %v859_v21, %v810_v27  ;;  %2447 = vmatmul.mubr.msk.bf16.gmra.mxu1 %vm1059_vm6, %v1037_v39 }
  0xac   : > { %v1010_v28 = vrot.slane %v3130_v26, 4  ;;  %v1012_v7 = vrot.slane %v3133_v40, 4 }
  0xae   : > { %v738_v34 = vpop.permute.xlu0 %737  ;;  %v740_v2 = vpop.permute.xlu1 %739  ;;  %v1011_v61 = vsel %vm1004_vm5, %v1008_v4, %v1010_v28  ;;  %v1013_v41 = vsel %vm1004_vm5, %v1010_v28, %v1012_v7 }
  0xaf   : > { %2422 = vmatprep.mubr.msk.bf16.mxu0 %vm1059_vm6, %v1011_v61  ;;  %v885_v46 = vsel %vm847_vm3, %v2787_v52, %v738_v34  ;;  %v887_v55 = vsel %vm847_vm3, %v2820_v23, %v740_v2 }
  0xb0   : > { %2423 = vmatmul.mubr.msk.bf16.gmra.mxu0 %vm1059_vm6, %v1013_v41 }
  0xb2   : > { %v836_v47 = vpop.permute.xlu0 %835  ;;  %v714_v14 = vpop.permute.xlu1 %713 }
  0xb3   : > { %v3145_v48 = vsel %vm896_vm4, %v885_v46, %v836_v47  ;;  %v861_v4 = vsel %vm847_vm3, %v2808_v11, %v714_v14 }
  0xb4   : > { %v1038_v45 = vrot.slane %v3145_v48, 4 }
  0xb6   : > { %v838_v59 = vpop.permute.xlu0 %837  ;;  %v716_v60 = vpop.permute.xlu1 %715  ;;  %v1039_v8 = vsel %vm1004_vm5, %v1036_v6, %v1038_v45 }
  0xb7   : > { %v3152_v3 = vsel %vm896_vm4, %v887_v55, %v838_v59  ;;  %2450 = vmatprep.mubr.msk.bf16.mxu1 %vm1059_vm6, %v1039_v8  ;;  %v863_v53 = vsel %vm847_vm3, %v2845_v36, %v716_v60 }
  0xb8   : > { %v1040_v52 = vrot.slane %v3152_v3, 4 }
  0xba   : > { %v812_v43 = vpop.permute.xlu0 %811  ;;  %v814_v50 = vpop.permute.xlu1 %813  ;;  %v1041_v23 = vsel %vm1004_vm5, %v1038_v45, %v1040_v52 }
  0xbb   : > { %v3162_v18 = vsel %vm896_vm4, %v861_v4, %v812_v43  ;;  %v3165_v25 = vsel %vm896_vm4, %v863_v53, %v814_v50  ;;  %2451 = vmatmul.mubr.msk.bf16.gmra.mxu1 %vm1059_vm6, %v1041_v23 }
  0xbc   : > { %v1014_v9 = vrot.slane %v3162_v18, 4  ;;  %v1016_v30 = vrot.slane %v3165_v25, 4 }
  0xbe   : > { %v742_v11 = vpop.permute.xlu0 %741  ;;  %v744_v5 = vpop.permute.xlu1 %743  ;;  %v1015_v36 = vsel %vm1004_vm5, %v1012_v7, %v1014_v9  ;;  %v1017_v19 = vsel %vm1004_vm5, %v1014_v9, %v1016_v30 }
  0xbf   : > { %2426 = vmatprep.mubr.msk.bf16.mxu0 %vm1059_vm6, %v1015_v36  ;;  %v889_v20 = vsel %vm847_vm3, %v2836_v31, %v742_v11  ;;  %v891_v58 = vsel %vm847_vm3, %v2876_v63, %v744_v5 }
  0xc0   : > { %2427 = vmatmul.mubr.msk.bf16.gmra.mxu0 %vm1059_vm6, %v1017_v19 }
  0xc2   : > { %v840_v44 = vpop.permute.xlu0 %839  ;;  %v718_v35 = vpop.permute.xlu1 %717 }
  0xc3   : > { %v3177_v33 = vsel %vm896_vm4, %v889_v20, %v840_v44  ;;  %v865_v28 = vsel %vm847_vm3, %v2862_v51, %v718_v35 }
  0xc4   : > { %v1042_v6 = vrot.slane %v3177_v33, 4 }
  0xc6   : > { %v842_v21 = vpop.permute.xlu0 %841  ;;  %v720_v56 = vpop.permute.xlu1 %719  ;;  %v1043_v27 = vsel %vm1004_vm5, %v1040_v52, %v1042_v6 }
  0xc7   : > { %v3184_v39 = vsel %vm896_vm4, %v891_v58, %v842_v21  ;;  %2454 = vmatprep.mubr.msk.bf16.mxu1 %vm1059_vm6, %v1043_v27  ;;  %v867_v7 = vsel %vm847_vm3, %v2903_v29, %v720_v56 }
  0xc8   : > { %v1044_v31 = vrot.slane %v3184_v39, 4 }
  0xca   : > { %v816_v34 = vpop.permute.xlu0 %815  ;;  %v818_v2 = vpop.permute.xlu1 %817  ;;  %v1045_v63 = vsel %vm1004_vm5, %v1042_v6, %v1044_v31 }
  0xcb   : > { %v3194_v61 = vsel %vm896_vm4, %v865_v28, %v816_v34  ;;  %v3197_v41 = vsel %vm896_vm4, %v867_v7, %v818_v2  ;;  %2455 = vmatmul.mubr.msk.bf16.gmra.mxu1 %vm1059_vm6, %v1045_v63 }
  0xcc   : > { %v1018_v46 = vrot.slane %v3194_v61, 4  ;;  %v1020_v47 = vrot.slane %v3197_v41, 4 }
  0xce   : > { %v746_v51 = vpop.permute.xlu0 %745  ;;  %v748_v14 = vpop.permute.xlu1 %747  ;;  %v1019_v29 = vsel %vm1004_vm5, %v1016_v30, %v1018_v46  ;;  %v1021_v45 = vsel %vm1004_vm5, %v1018_v46, %v1020_v47 }
  0xcf   : > { %2430 = vmatprep.mubr.msk.bf16.mxu0 %vm1059_vm6, %v1019_v29  ;;  %v893_v55 = vsel %vm847_vm3, %v2893_v22, %v746_v51  ;;  %v895_v4 = vsel %vm847_vm3, %v2956_v12, %v748_v14 }
  0xd0   : > { %2431 = vmatmul.mubr.msk.bf16.gmra.mxu0 %vm1059_vm6, %v1021_v45 }
  0xd2   : > { %v844_v59 = vpop.permute.xlu0 %843  ;;  %v722_v60 = vpop.permute.xlu1 %721 }
  0xd3   : > { %v3209_v8 = vsel %vm896_vm4, %v893_v55, %v844_v59  ;;  %v869_v9 = vsel %vm847_vm3, %v2933_v49, %v722_v60 }
  0xd4   : > { %v1046_v52 = vrot.slane %v3209_v8, 4 }
  0xd6   : > { %v846_v53 = vpop.permute.xlu0 %845  ;;  %v724_v43 = vpop.permute.xlu1 %723  ;;  %v1047_v50 = vsel %vm1004_vm5, %v1044_v31, %v1046_v52 }
  0xd7   : > { %v3216_v23 = vsel %vm896_vm4, %v895_v4, %v846_v53  ;;  %2458 = vmatprep.mubr.msk.bf16.mxu1 %vm1059_vm6, %v1047_v50  ;;  %v871_v30 = vsel %vm847_vm3, %v2991_v15, %v724_v43 }
  0xd8   : > { %v1048_v22 = vrot.slane %v3216_v23, 4 }
  0xda   : > { %v820_v11 = vpop.permute.xlu0 %819  ;;  %v822_v5 = vpop.permute.xlu1 %821  ;;  %v1049_v12 = vsel %vm1004_vm5, %v1046_v52, %v1048_v22 }
  0xdb   : > { %v918_v36 = vsel %vm896_vm4, %v869_v9, %v820_v11  ;;  %v920_v19 = vsel %vm896_vm4, %v871_v30, %v822_v5  ;;  %2459 = vmatmul.mubr.msk.bf16.gmra.mxu1 %vm1059_vm6, %v1049_v12 }
  0xdc   : > { %v1022_v20 = vrot.slane %v918_v36, 4  ;;  %v1024_v44 = vrot.slane %v920_v19, 4 }
  0xde   : > { %v959_v35 = vpop.permute.xlu0 %958  ;;  %v961_v6 = vpop.permute.xlu1 %960  ;;  %v1023_v58 = vsel %vm1004_vm5, %v1020_v47, %v1022_v20  ;;  %v1025_v49 = vsel %vm1004_vm5, %v1022_v20, %v1024_v44 }
  0xdf   : > { %2434 = vmatprep.mubr.msk.bf16.mxu0 %vm1059_vm6, %v1023_v58  ;;  %v969_v15 = vsel %vm847_vm3, %v2974_v32, %v959_v35  ;;  %v971_v28 = vsel %vm847_vm3, %v3012_v37, %v961_v6 }
  0xe0   : > { %2435 = vmatmul.mubr.msk.bf16.gmra.mxu0 %vm1059_vm6, %v1025_v49 }
  0xe2   : > { %v965_v21 = vpop.permute.xlu0 %964  ;;  %v726_v56 = vpop.permute.xlu1 %725 }
  0xe3   : > { %v3235_v27 = vsel %vm896_vm4, %v969_v15, %v965_v21  ;;  %v873_v7 = vsel %vm847_vm3, %v2851_v42, %v726_v56 }
  0xe4   : > { %v1050_v31 = vrot.slane %v3235_v27, 4 }
  0xe6   : > { %v967_v34 = vpop.permute.xlu0 %966  ;;  %v824_v2 = vpop.permute.xlu1 %823  ;;  %v1051_v63 = vsel %vm1004_vm5, %v1048_v22, %v1050_v31 }
  0xe7   : > { %v975_v46 = vsel %vm896_vm4, %v971_v28, %v967_v34  ;;  %v922_v32 = vsel %vm896_vm4, %v873_v7, %v824_v2  ;;  %2462 = vmatprep.mubr.msk.bf16.mxu1 %vm1059_vm6, %v1051_v63 }
  0xe8   : > { %v1052_v47 = vrot.slane %v975_v46, 4  ;;  %v1026_v51 = vrot.slane %v922_v32, 4 }
  0xea   : > { %v1027_v14 = vsel %vm1004_vm5, %v1024_v44, %v1026_v51  ;;  %v1053_v29 = vsel %vm1004_vm5, %v1050_v31, %v1052_v47  ;;  %v1029_v42 = vsel %vm1004_vm5, %v1026_v51, %v1028_v16  ;;  %v702_v45 = vpop.permute.xlu0 %701  ;;  %v800_v55 = vpop.permute.xlu1 %799 }
  0xeb   : > { %2438 = vmatprep.mubr.msk.bf16.mxu0 %vm1059_vm6, %v1027_v14  ;;  %2463 = vmatmul.mubr.msk.bf16.gmra.mxu1 %vm1059_vm6, %v1053_v29  ;;  %v849_v59 = vsel %vm847_vm3, %v2866_v54, %v702_v45 }
  0xec   : > { %2439 = vmatmul.mubr.msk.bf16.gmra.mxu0 %vm1059_vm6, %v1029_v42  ;;  %v898_v60 = vsel %vm896_vm4, %v849_v59, %v800_v55  ;;  %v3442_v42 = vld [vmem:[%s3649_s3] ss:$0 sm:$0xff] }
  0xed   : > { %2518 = vmatprep.mubr.msk.bf16.mxu0 %vm1059_vm6, %v3100_v10  ;;  %2468 = vmatprep.mubr.msk.bf16.mxu1 %vm1059_vm6, %v898_v60 }
  0xee   : > { %v1656_v54 = vpop.permute.xlu0 %1655  ;;  %v1658_v16 = vpop.permute.xlu1 %1657 }
  0xf3   : > { %2469 = vmatmul.mubr.msk.bf16.vlgmr.msra.gmra.mxu1 %vm1059_vm6, %v3089_v1  ;;  %v1670_v1 = vsel %vm847_vm3, %v2959_v13, %v1658_v16 }
  0xf4   : > { %2472 = vmatprep.mubr.msk.bf16.mxu1 %vm1059_vm6, %v3097_v62  ;;  %2519 = vmatmul.mubr.msk.bf16.vlgmr.msra.gmra.mxu0 %vm1059_vm6, %v3130_v26  ;;  %v1666_v62 = vpop.permute.xlu1 %1665 }
  0xf5   : > { %2522 = vmatprep.mubr.msk.bf16.mxu0 %vm1059_vm6, %v3133_v40 }
  0xfb   : > { %2473 = vmatmul.mubr.msk.bf16.gmra.mxu1 %vm1059_vm6, %v3100_v10 }
  0xfc   : > { %2476 = vmatprep.mubr.msk.bf16.mxu1 %vm1059_vm6, %v3130_v26  ;;  %2523 = vmatmul.mubr.msk.bf16.gmra.mxu0 %vm1059_vm6, %v3162_v18 }
  0xfd   : > { %2526 = vmatprep.mubr.msk.bf16.mxu0 %vm1059_vm6, %v3165_v25 }
 0x103   : > { %2477 = vmatmul.mubr.msk.bf16.gmra.mxu1 %vm1059_vm6, %v3133_v40 }
 0x104   : > { %2480 = vmatprep.mubr.msk.bf16.mxu1 %vm1059_vm6, %v3162_v18  ;;  %2527 = vmatmul.mubr.msk.bf16.gmra.mxu0 %vm1059_vm6, %v3194_v61 }
 0x105   : > { %2530 = vmatprep.mubr.msk.bf16.mxu0 %vm1059_vm6, %v3197_v41 }
 0x10b   : > { %2481 = vmatmul.mubr.msk.bf16.gmra.mxu1 %vm1059_vm6, %v3165_v25 }
 0x10c   : > { %2484 = vmatprep.mubr.msk.bf16.mxu1 %vm1059_vm6, %v3194_v61  ;;  %2531 = vmatmul.mubr.msk.bf16.gmra.mxu0 %vm1059_vm6, %v918_v36 }
 0x10d   : > { %2534 = vmatprep.mubr.msk.bf16.mxu0 %vm1059_vm6, %v920_v19 }
 0x113   : > { %2485 = vmatmul.mubr.msk.bf16.gmra.mxu1 %vm1059_vm6, %v3197_v41 }
 0x114   : > { %2488 = vmatprep.mubr.msk.bf16.mxu1 %vm1059_vm6, %v918_v36  ;;  %2535 = vmatmul.mubr.msk.bf16.gmra.mxu0 %vm1059_vm6, %v922_v32 }
 0x115   : > { %2538 = vmatprep.mubr.msk.bf16.mxu0 %vm1059_vm6, %v3065_v57 }
 0x11b   : > { %2489 = vmatmul.mubr.msk.bf16.gmra.mxu1 %vm1059_vm6, %v920_v19 }
 0x11c   : > { %2492 = vmatprep.mubr.msk.bf16.mxu1 %vm1059_vm6, %v922_v32  ;;  %2539 = vmatmul.mubr.msk.bf16.gmra.mxu0 %vm1059_vm6, %v3070_v38 }
 0x11d   : > { %2542 = vmatprep.mubr.msk.bf16.mxu0 %vm1059_vm6, %v3080_v0 }
 0x123   : > { %2493 = vmatmul.mubr.msk.bf16.gmra.mxu1 %vm1059_vm6, %v3065_v57  ;;  %v1668_v57 = vsel %vm847_vm3, %v3012_v37, %v1656_v54  ;;  %v1674_v37 = vsel %vm896_vm4, %v1670_v1, %v1666_v62 }
 0x124   : > { %2496 = vmatprep.mubr.msk.bf16.mxu1 %vm1059_vm6, %v3070_v38  ;;  %2543 = vmatmul.mubr.msk.bf16.gmra.mxu0 %vm1059_vm6, %v3113_v17  ;;  %v1664_v38 = vpop.permute.xlu0 %1663 }
 0x125   : > { %2546 = vmatprep.mubr.msk.bf16.mxu0 %vm1059_vm6, %v3120_v24 }
 0x12b   : > { %2497 = vmatmul.mubr.msk.bf16.gmra.mxu1 %vm1059_vm6, %v3080_v0  ;;  %v1672_v0 = vsel %vm896_vm4, %v1668_v57, %v1664_v38 }
 0x12c   : > { %2500 = vmatprep.mubr.msk.bf16.mxu1 %vm1059_vm6, %v3113_v17  ;;  %2547 = vmatmul.mubr.msk.bf16.gmra.mxu0 %vm1059_vm6, %v3145_v48 }
 0x12d   : > { %2550 = vmatprep.mubr.msk.bf16.mxu0 %vm1059_vm6, %v3152_v3 }
 0x133   : > { %2501 = vmatmul.mubr.msk.bf16.gmra.mxu1 %vm1059_vm6, %v3120_v24 }
 0x134   : > { %2504 = vmatprep.mubr.msk.bf16.mxu1 %vm1059_vm6, %v3145_v48  ;;  %2551 = vmatmul.mubr.msk.bf16.gmra.mxu0 %vm1059_vm6, %v3177_v33 }
 0x135   : > { %2554 = vmatprep.mubr.msk.bf16.mxu0 %vm1059_vm6, %v3184_v39 }
 0x13b   : > { %2505 = vmatmul.mubr.msk.bf16.gmra.mxu1 %vm1059_vm6, %v3152_v3 }
 0x13c   : > { %2508 = vmatprep.mubr.msk.bf16.mxu1 %vm1059_vm6, %v3177_v33  ;;  %2555 = vmatmul.mubr.msk.bf16.gmra.mxu0 %vm1059_vm6, %v3209_v8 }
 0x13d   : > { %2558 = vmatprep.mubr.msk.bf16.mxu0 %vm1059_vm6, %v3216_v23 }
 0x143   : > { %2509 = vmatmul.mubr.msk.bf16.gmra.mxu1 %vm1059_vm6, %v3184_v39 }
 0x144   : > { %2559 = vmatmul.mubr.msk.bf16.gmra.mxu0 %vm1059_vm6, %v3235_v27  ;;  %2512 = vmatprep.mubr.msk.bf16.mxu1 %vm1059_vm6, %v3209_v8 }
 0x145   : > { %2562 = vmatprep.mubr.msk.bf16.mxu0 %vm1059_vm6, %v1672_v0 }
 0x14b   : > { %2513 = vmatmul.mubr.msk.bf16.gmra.mxu1 %vm1059_vm6, %v3216_v23 }
 0x14c   : > { %2563 = vmatmul.mubr.msk.bf16.gmra.mxu0 %vm1059_vm6, %v1674_v37 }
 0x158   : > { %v3350_v10 = vpop.f32.mrf.mxu1 }
 0x15a   : > { %v3352_v24 = vpop.f32.mrf.mxu1 }
 0x15c   : > { %v3354_v40 = vpop.f32.mrf.mxu1 }
 0x15e   : > { %v3356_v3 = vpop.f32.mrf.mxu1 }
 0x160   : > { %v2420_v17 = vpop.f32.mrf.mxu0 }
 0x162   : > { %v1170_v26 = vpop.f32.mrf.mxu0 }
 0x164   : > { %v2421_v48 = vpop.f32.mrf.mxu0 }
 0x166   : > { %v1173_v18 = vpop.f32.mrf.mxu0 }
 0x16b   : > { %v3358_v13 = vpop.f32.mrf.mxu1 }
 0x16d   : > { %v3362_v33 = vpop.f32.mrf.mxu1 }
 0x16f   : > { %v3366_v61 = vpop.f32.mrf.mxu1 }
 0x170   : > { %v3360_v25 = vpop.f32.mrf.mxu0 }
 0x171   : > { %v3370_v8 = vpop.f32.mrf.mxu1 }
 0x172   : > { %v3364_v39 = vpop.f32.mrf.mxu0 }
 0x174   : > { %v3368_v41 = vpop.f32.mrf.mxu0 }
 0x176   : > { %v3374_v4 = vpop.f32.mrf.mxu0 }
 0x17b   : > { %v3372_v52 = vpop.f32.mrf.mxu1 }
 0x17d   : > { %v3378_v43 = vpop.f32.mrf.mxu1 }
 0x17f   : > { %v3382_v23 = vpop.f32.mrf.mxu1 }
 0x180   : > { %v3376_v53 = vpop.f32.mrf.mxu0 }
 0x181   : > { %v3386_v9 = vpop.f32.mrf.mxu1 }
 0x182   : > { %v3380_v50 = vpop.f32.mrf.mxu0 }
 0x184   : > { %v3384_v22 = vpop.f32.mrf.mxu0 }
 0x186   : > { %v3390_v11 = vpop.f32.mrf.mxu0 }
 0x18b   : > { %v3388_v30 = vpop.f32.mrf.mxu1 }
 0x18d   : > { %v3394_v12 = vpop.f32.mrf.mxu1 }
 0x18f   : > { %v3398_v19 = vpop.f32.mrf.mxu1 }
 0x190   : > { %v3392_v5 = vpop.f32.mrf.mxu0 }
 0x191   : > { %v3402_v44 = vpop.f32.mrf.mxu1 }
 0x192   : > { %v3396_v36 = vpop.f32.mrf.mxu0 }
 0x194   : > { %v3400_v20 = vpop.f32.mrf.mxu0 }
 0x196   : > { %v3406_v6 = vpop.f32.mrf.mxu0 }
 0x19b   : > { %v3404_v35 = vpop.f32.mrf.mxu1 }
 0x19d   : > { %v3410_v49 = vpop.f32.mrf.mxu1 }
 0x19f   : > { %v3414_v21 = vpop.f32.mrf.mxu1 }
 0x1a0   : > { %v3408_v58 = vpop.f32.mrf.mxu0 }
 0x1a1   : > { %v3418_v27 = vpop.f32.mrf.mxu1 }
 0x1a2   : > { %v3412_v15 = vpop.f32.mrf.mxu0 }
 0x1a4   : > { %v3416_v56 = vpop.f32.mrf.mxu0 }
 0x1a6   : > { %v3420_v31 = vpop.f32.mrf.mxu0 }
 0x1ab   : > { %v3422_v28 = vpop.f32.mrf.mxu1 }
 0x1ac   : > { %v3424_v7 = vpop.f32.mrf.mxu0 }
 0x1ad   : > { %v3426_v34 = vpop.f32.mrf.mxu1 }
 0x1ae   : > { %v3428_v2 = vpop.f32.mrf.mxu0 }
 0x1af   : > { %v3430_v63 = vpop.f32.mrf.mxu1 }
 0x1b0   : > { %v3432_v46 = vpop.f32.mrf.mxu0 }
 0x1b1   : > { %v3434_v32 = vpop.f32.mrf.mxu1 }
 0x1b2   : > { %v3436_v47 = vpop.f32.mrf.mxu0 }
 0x1b3   : > { %v2470_v51 = vpop.f32.mrf.mxu1 }
 0x1b4   : > { %v1460_v14 = vadd.f32 %v2470_v51, %v2420_v17  ;;  %v2520_v29 = vpop.f32.mrf.mxu0 }
 0x1b5   : > { %v1451_v45 = vpop.f32.mrf.mxu1 }
 0x1b6   : > { %v1919_v55 = vadd.f32 %v2520_v29, %v1460_v14  ;;  %v1452_v59 = vadd.f32 %v1451_v45, %v1170_v26  ;;  %v1726_v60 = vpop.f32.mrf.mxu0 }
 0x1b7   : > { %v2471_v54 = vpop.f32.mrf.mxu1 }
 0x1b8   : > { %v1974_v57 = vadd.f32 %v3442_v42, %v1919_v55  ;;  %v1917_v38 = vadd.f32 %v1726_v60, %v1452_v59  ;;  %v1463_v16 = vadd.f32 %v2471_v54, %v2421_v48  ;;  %v2521_v0 = vpop.f32.mrf.mxu0 }
 0x1b9   : > { %v1454_v1 = vpop.f32.mrf.mxu1 }
 0x1ba   : > { %v2022_v62 = vmax.f32 %v1974_v57, 0.0  ;;  %v1972_v37 = vadd.f32 %v3442_v42, %v1917_v38  ;;  %v1920_v17 = vadd.f32 %v2521_v0, %v1463_v16  ;;  %v1455_v26 = vadd.f32 %v1454_v1, %v1173_v18  ;;  %v1729_v51 = vpop.f32.mrf.mxu0 }
 0x1bb   : > { %v2474_v14 = vpop.f32.mrf.mxu1 }
 0x1bc   : > { %2070 = vst.msk [vmem:[%s3448_s14 + $0x10] sm:$0xff] %vm896_vm4, %v2022_v62  ;;  %v2020_v48 = vmax.f32 %v1972_v37, 0.0  ;;  %v1975_v29 = vadd.f32 %v3442_v42, %v1920_v17  ;;  %v1918_v45 = vadd.f32 %v1729_v51, %v1455_v26  ;;  %v1476_v55 = vadd.f32 %v2474_v14, %v3360_v25  ;;  %v2524_v59 = vpop.f32.mrf.mxu0 }
 0x1bd   : > { %v1467_v60 = vpop.f32.mrf.mxu1 }
 0x1be   : > { %2068 = vst.msk [vmem:[%s3448_s14] sm:$0xff] %vm896_vm4, %v2020_v48  ;;  %v2023_v54 = vmax.f32 %v1975_v29, 0.0  ;;  %v1973_v57 = vadd.f32 %v3442_v42, %v1918_v45  ;;  %v1923_v18 = vadd.f32 %v2524_v59, %v1476_v55  ;;  %v1468_v38 = vadd.f32 %v1467_v60, %v3364_v39  ;;  %v1742_v16 = vpop.f32.mrf.mxu0 }
 0x1bf   : > { %v2475_v0 = vpop.f32.mrf.mxu1 }
 0x1c0   : > { %2071 = vst.msk [vmem:[%s3448_s14 + $0x18] sm:$0xff] %vm896_vm4, %v2023_v54  ;;  %v2021_v1 = vmax.f32 %v1973_v57, 0.0  ;;  %v1978_v62 = vadd.f32 %v3442_v42, %v1923_v18  ;;  %v1921_v25 = vadd.f32 %v1742_v16, %v1468_v38  ;;  %v1479_v37 = vadd.f32 %v2475_v0, %v3368_v41  ;;  %v2525_v17 = vpop.f32.mrf.mxu0 }
 0x1c1   : > { %v1470_v26 = vpop.f32.mrf.mxu1 }
 0x1c2   : > { %2069 = vst.msk [vmem:[%s3448_s14 + $0x8] sm:$0xff] %vm896_vm4, %v2021_v1  ;;  %v2026_v51 = vmax.f32 %v1978_v62, 0.0  ;;  %v1976_v14 = vadd.f32 %v3442_v42, %v1921_v25  ;;  %v1924_v39 = vadd.f32 %v2525_v17, %v1479_v37  ;;  %v1471_v48 = vadd.f32 %v1470_v26, %v3374_v4  ;;  %v1745_v29 = vpop.f32.mrf.mxu0 }
 0x1c3   : > { %v2478_v45 = vpop.f32.mrf.mxu1 }
 0x1c4   : > { %2074 = vst.msk [vmem:[%s3448_s14 + $0x30] sm:$0xff] %vm896_vm4, %v2026_v51  ;;  %v2024_v55 = vmax.f32 %v1976_v14, 0.0  ;;  %v1979_v59 = vadd.f32 %v3442_v42, %v1924_v39  ;;  %v1922_v41 = vadd.f32 %v1745_v29, %v1471_v48  ;;  %v1492_v60 = vadd.f32 %v2478_v45, %v3376_v53  ;;  %v2528_v54 = vpop.f32.mrf.mxu0 }
 0x1c5   : > { %v1483_v57 = vpop.f32.mrf.mxu1 }
 0x1c6   : > { %2072 = vst.msk [vmem:[%s3448_s14 + $0x20] sm:$0xff] %vm896_vm4, %v2024_v55  ;;  %v2027_v18 = vmax.f32 %v1979_v59, 0.0  ;;  %v1977_v38 = vadd.f32 %v3442_v42, %v1922_v41  ;;  %v1927_v4 = vadd.f32 %v2528_v54, %v1492_v60  ;;  %v1484_v16 = vadd.f32 %v1483_v57, %v3380_v50  ;;  %v1758_v0 = vpop.f32.mrf.mxu0 }
 0x1c7   : > { %v2479_v1 = vpop.f32.mrf.mxu1 }
 0x1c8   : > { %2075 = vst.msk [vmem:[%s3448_s14 + $0x38] sm:$0xff] %vm896_vm4, %v2027_v18  ;;  %v2025_v62 = vmax.f32 %v1977_v38, 0.0  ;;  %v1982_v25 = vadd.f32 %v3442_v42, %v1927_v4  ;;  %v1925_v53 = vadd.f32 %v1758_v0, %v1484_v16  ;;  %v1495_v37 = vadd.f32 %v2479_v1, %v3384_v22  ;;  %v2529_v17 = vpop.f32.mrf.mxu0 }
 0x1c9   : > { %v1486_v26 = vpop.f32.mrf.mxu1 }
 0x1ca   : > { %2073 = vst.msk [vmem:[%s3448_s14 + $0x28] sm:$0xff] %vm896_vm4, %v2025_v62  ;;  %v2030_v51 = vmax.f32 %v1982_v25, 0.0  ;;  %v1980_v14 = vadd.f32 %v3442_v42, %v1925_v53  ;;  %v1928_v50 = vadd.f32 %v2529_v17, %v1495_v37  ;;  %v1487_v39 = vadd.f32 %v1486_v26, %v3390_v11  ;;  %v1761_v48 = vpop.f32.mrf.mxu0 }
 0x1cb   : > { %v2482_v29 = vpop.f32.mrf.mxu1 }
 0x1cc   : > { %2078 = vst.msk [vmem:[%s3448_s14 + $0x50] sm:$0xff] %vm896_vm4, %v2030_v51  ;;  %v2028_v45 = vmax.f32 %v1980_v14, 0.0  ;;  %v1983_v55 = vadd.f32 %v3442_v42, %v1928_v50  ;;  %v1926_v22 = vadd.f32 %v1761_v48, %v1487_v39  ;;  %v1508_v59 = vadd.f32 %v2482_v29, %v3392_v5  ;;  %v2532_v41 = vpop.f32.mrf.mxu0 }
 0x1cd   : > { %v1499_v60 = vpop.f32.mrf.mxu1 }
 0x1ce   : > { %2076 = vst.msk [vmem:[%s3448_s14 + $0x40] sm:$0xff] %vm896_vm4, %v2028_v45  ;;  %v2031_v54 = vmax.f32 %v1983_v55, 0.0  ;;  %v1981_v57 = vadd.f32 %v3442_v42, %v1926_v22  ;;  %v1931_v11 = vadd.f32 %v2532_v41, %v1508_v59  ;;  %v1500_v18 = vadd.f32 %v1499_v60, %v3396_v36  ;;  %v1774_v38 = vpop.f32.mrf.mxu0 }
 0x1cf   : > { %v2483_v4 = vpop.f32.mrf.mxu1 }
 0x1d0   : > { %2079 = vst.msk [vmem:[%s3448_s14 + $0x58] sm:$0xff] %vm896_vm4, %v2031_v54  ;;  %v2029_v16 = vmax.f32 %v1981_v57, 0.0  ;;  %v1986_v0 = vadd.f32 %v3442_v42, %v1931_v11  ;;  %v1929_v5 = vadd.f32 %v1774_v38, %v1500_v18  ;;  %v1511_v1 = vadd.f32 %v2483_v4, %v3400_v20  ;;  %v2533_v62 = vpop.f32.mrf.mxu0 }
 0x1d1   : > { %v1502_v25 = vpop.f32.mrf.mxu1 }
 0x1d2   : > { %2077 = vst.msk [vmem:[%s3448_s14 + $0x48] sm:$0xff] %vm896_vm4, %v2029_v16  ;;  %v2034_v53 = vmax.f32 %v1986_v0, 0.0  ;;  %v1984_v37 = vadd.f32 %v3442_v42, %v1929_v5  ;;  %v1932_v36 = vadd.f32 %v2533_v62, %v1511_v1  ;;  %v1503_v17 = vadd.f32 %v1502_v25, %v3406_v6  ;;  %v1777_v26 = vpop.f32.mrf.mxu0 }
 0x1d3   : > { %v2486_v51 = vpop.f32.mrf.mxu1 }
 0x1d4   : > { %2082 = vst.msk [vmem:[%s3448_s14 + $0x70] sm:$0xff] %vm896_vm4, %v2034_v53  ;;  %v2032_v14 = vmax.f32 %v1984_v37, 0.0  ;;  %v1987_v50 = vadd.f32 %v3442_v42, %v1932_v36  ;;  %v1930_v20 = vadd.f32 %v1777_v26, %v1503_v17  ;;  %v1524_v39 = vadd.f32 %v2486_v51, %v3408_v58  ;;  %v2536_v48 = vpop.f32.mrf.mxu0 }
 0x1d5   : > { %v1515_v29 = vpop.f32.mrf.mxu1 }
 0x1d6   : > { %2080 = vst.msk [vmem:[%s3448_s14 + $0x60] sm:$0xff] %vm896_vm4, %v2032_v14  ;;  %v2035_v45 = vmax.f32 %v1987_v50, 0.0  ;;  %v1985_v55 = vadd.f32 %v3442_v42, %v1930_v20  ;;  %v1935_v6 = vadd.f32 %v2536_v48, %v1524_v39  ;;  %v1516_v22 = vadd.f32 %v1515_v29, %v3412_v15  ;;  %v1790_v59 = vpop.f32.mrf.mxu0 }
 0x1d7   : > { %v2487_v41 = vpop.f32.mrf.mxu1 }
 0x1d8   : > { %2083 = vst.msk [vmem:[%s3448_s14 + $0x78] sm:$0xff] %vm896_vm4, %v2035_v45  ;;  %v2033_v60 = vmax.f32 %v1985_v55, 0.0  ;;  %v1990_v54 = vadd.f32 %v3442_v42, %v1935_v6  ;;  %v1933_v58 = vadd.f32 %v1790_v59, %v1516_v22  ;;  %v1527_v57 = vadd.f32 %v2487_v41, %v3416_v56  ;;  %v2537_v11 = vpop.f32.mrf.mxu0 }
 0x1d9   : > { %v1518_v18 = vpop.f32.mrf.mxu1 }
 0x1da   : > { %2081 = vst.msk [vmem:[%s3448_s14 + $0x68] sm:$0xff] %vm896_vm4, %v2033_v60  ;;  %v2038_v38 = vmax.f32 %v1990_v54, 0.0  ;;  %v1988_v4 = vadd.f32 %v3442_v42, %v1933_v58  ;;  %v1936_v15 = vadd.f32 %v2537_v11, %v1527_v57  ;;  %v1519_v16 = vadd.f32 %v1518_v18, %v3420_v31  ;;  %v1793_v0 = vpop.f32.mrf.mxu0 }
 0x1db   : > { %v2490_v5 = vpop.f32.mrf.mxu1 }
 0x1dc   : > { %2086 = vst.msk [vmem:[%s3448_s14 + $0x90] sm:$0xff] %vm896_vm4, %v2038_v38  ;;  %v2036_v1 = vmax.f32 %v1988_v4, 0.0  ;;  %v1991_v62 = vadd.f32 %v3442_v42, %v1936_v15  ;;  %v1934_v56 = vadd.f32 %v1793_v0, %v1519_v16  ;;  %v1540_v25 = vadd.f32 %v2490_v5, %v3424_v7  ;;  %v2540_v53 = vpop.f32.mrf.mxu0 }
 0x1dd   : > { %v1531_v37 = vpop.f32.mrf.mxu1 }
 0x1de   : > { %2084 = vst.msk [vmem:[%s3448_s14 + $0x80] sm:$0xff] %vm896_vm4, %v2036_v1  ;;  %v2039_v36 = vmax.f32 %v1991_v62, 0.0  ;;  %v1989_v17 = vadd.f32 %v3442_v42, %v1934_v56  ;;  %v1939_v31 = vadd.f32 %v2540_v53, %v1540_v25  ;;  %v1532_v26 = vadd.f32 %v1531_v37, %v3428_v2  ;;  %v1806_v51 = vpop.f32.mrf.mxu0 }
 0x1df   : > { %v2491_v14 = vpop.f32.mrf.mxu1 }
 0x1e0   : > { %2087 = vst.msk [vmem:[%s3448_s14 + $0x98] sm:$0xff] %vm896_vm4, %v2039_v36  ;;  %v2037_v50 = vmax.f32 %v1989_v17, 0.0  ;;  %v1994_v20 = vadd.f32 %v3442_v42, %v1939_v31  ;;  %v1937_v7 = vadd.f32 %v1806_v51, %v1532_v26  ;;  %v1543_v39 = vadd.f32 %v2491_v14, %v3432_v46  ;;  %v2541_v48 = vpop.f32.mrf.mxu0 }
 0x1e1   : > { %v1534_v29 = vpop.f32.mrf.mxu1 }
 0x1e2   : > { %2085 = vst.msk [vmem:[%s3448_s14 + $0x88] sm:$0xff] %vm896_vm4, %v2037_v50  ;;  %v2042_v45 = vmax.f32 %v1994_v20, 0.0  ;;  %v1992_v55 = vadd.f32 %v3442_v42, %v1937_v7  ;;  %v1940_v2 = vadd.f32 %v2541_v48, %v1543_v39  ;;  %v1535_v6 = vadd.f32 %v1534_v29, %v3436_v47  ;;  %v1809_v22 = vpop.f32.mrf.mxu0 }
 0x1e3   : > { %v2494_v59 = vpop.f32.mrf.mxu1 }
 0x1e4   : > { %2090 = vst.msk [vmem:[%s3448_s14 + $0xb0] sm:$0xff] %vm896_vm4, %v2042_v45  ;;  %v2040_v41 = vmax.f32 %v1992_v55, 0.0  ;;  %v1995_v60 = vadd.f32 %v3442_v42, %v1940_v2  ;;  %v1938_v46 = vadd.f32 %v1809_v22, %v1535_v6  ;;  %v1556_v54 = vadd.f32 %v2494_v59, %v3350_v10  ;;  %v2544_v58 = vpop.f32.mrf.mxu0 }
 0x1e5   : > { %v1547_v57 = vpop.f32.mrf.mxu1 }
 0x1e6   : > { %2088 = vst.msk [vmem:[%s3448_s14 + $0xa0] sm:$0xff] %vm896_vm4, %v2040_v41  ;;  %v2043_v11 = vmax.f32 %v1995_v60, 0.0  ;;  %v1993_v18 = vadd.f32 %v3442_v42, %v1938_v46  ;;  %v1943_v47 = vadd.f32 %v2544_v58, %v1556_v54  ;;  %v1548_v38 = vadd.f32 %v1547_v57, %v3352_v24  ;;  %v1822_v4 = vpop.f32.mrf.mxu0 }
 0x1e7   : > { %v2495_v15 = vpop.f32.mrf.mxu1 }
 0x1e8   : > { %2091 = vst.msk [vmem:[%s3448_s14 + $0xb8] sm:$0xff] %vm896_vm4, %v2043_v11  ;;  %v2041_v16 = vmax.f32 %v1993_v18, 0.0  ;;  %v1998_v0 = vadd.f32 %v3442_v42, %v1943_v47  ;;  %v1941_v10 = vadd.f32 %v1822_v4, %v1548_v38  ;;  %v1559_v5 = vadd.f32 %v2495_v15, %v3354_v40  ;;  %v2545_v1 = vpop.f32.mrf.mxu0 }
 0x1e9   : > { %v1550_v62 = vpop.f32.mrf.mxu1 }
 0x1ea   : > { %2089 = vst.msk [vmem:[%s3448_s14 + $0xa8] sm:$0xff] %vm896_vm4, %v2041_v16  ;;  %v2046_v56 = vmax.f32 %v1998_v0, 0.0  ;;  %v1996_v25 = vadd.f32 %v3442_v42, %v1941_v10  ;;  %v1944_v24 = vadd.f32 %v2545_v1, %v1559_v5  ;;  %v1551_v53 = vadd.f32 %v1550_v62, %v3356_v3  ;;  %v1825_v37 = vpop.f32.mrf.mxu0 }
 0x1eb   : > { %v2498_v36 = vpop.f32.mrf.mxu1 }
 0x1ec   : > { %2094 = vst.msk [vmem:[%s3448_s14 + $0xd0] sm:$0xff] %vm896_vm4, %v2046_v56  ;;  %v2044_v17 = vmax.f32 %v1996_v25, 0.0  ;;  %v1999_v31 = vadd.f32 %v3442_v42, %v1944_v24  ;;  %v1942_v40 = vadd.f32 %v1825_v37, %v1551_v53  ;;  %v1572_v26 = vadd.f32 %v2498_v36, %v3358_v13  ;;  %v2548_v51 = vpop.f32.mrf.mxu0 }
 0x1ed   : > { %v1563_v14 = vpop.f32.mrf.mxu1 }
 0x1ee   : > { %2092 = vst.msk [vmem:[%s3448_s14 + $0xc0] sm:$0xff] %vm896_vm4, %v2044_v17  ;;  %v2047_v50 = vmax.f32 %v1999_v31, 0.0  ;;  %v1997_v20 = vadd.f32 %v3442_v42, %v1942_v40  ;;  %v1947_v3 = vadd.f32 %v2548_v51, %v1572_v26  ;;  %v1564_v7 = vadd.f32 %v1563_v14, %v3362_v33  ;;  %v1838_v39 = vpop.f32.mrf.mxu0 }
 0x1ef   : > { %v2499_v48 = vpop.f32.mrf.mxu1 }
 0x1f0   : > { %2095 = vst.msk [vmem:[%s3448_s14 + $0xd8] sm:$0xff] %vm896_vm4, %v2047_v50  ;;  %v2045_v29 = vmax.f32 %v1997_v20, 0.0  ;;  %v2002_v45 = vadd.f32 %v3442_v42, %v1947_v3  ;;  %v1945_v13 = vadd.f32 %v1838_v39, %v1564_v7  ;;  %v1575_v55 = vadd.f32 %v2499_v48, %v3366_v61  ;;  %v2549_v2 = vpop.f32.mrf.mxu0 }
 0x1f1   : > { %v1566_v6 = vpop.f32.mrf.mxu1 }
 0x1f2   : > { %2093 = vst.msk [vmem:[%s3448_s14 + $0xc8] sm:$0xff] %vm896_vm4, %v2045_v29  ;;  %v2050_v22 = vmax.f32 %v2002_v45, 0.0  ;;  %v2000_v59 = vadd.f32 %v3442_v42, %v1945_v13  ;;  %v1948_v33 = vadd.f32 %v2549_v2, %v1575_v55  ;;  %v1567_v41 = vadd.f32 %v1566_v6, %v3370_v8  ;;  %v1841_v60 = vpop.f32.mrf.mxu0 }
 0x1f3   : > { %v2502_v46 = vpop.f32.mrf.mxu1 }
 0x1f4   : > { %2098 = vst.msk [vmem:[%s3448_s14 + $0xf0] sm:$0xff] %vm896_vm4, %v2050_v22  ;;  %v2048_v54 = vmax.f32 %v2000_v59, 0.0  ;;  %v2003_v58 = vadd.f32 %v3442_v42, %v1948_v33  ;;  %v1946_v61 = vadd.f32 %v1841_v60, %v1567_v41  ;;  %v1588_v57 = vadd.f32 %v2502_v46, %v3372_v52  ;;  %v2552_v11 = vpop.f32.mrf.mxu0 }
 0x1f5   : > { %v1579_v18 = vpop.f32.mrf.mxu1 }
 0x1f6   : > { %2096 = vst.msk [vmem:[%s3448_s14 + $0xe0] sm:$0xff] %vm896_vm4, %v2048_v54  ;;  %v2051_v47 = vmax.f32 %v2003_v58, 0.0  ;;  %v2001_v38 = vadd.f32 %v3442_v42, %v1946_v61  ;;  %v1951_v8 = vadd.f32 %v2552_v11, %v1588_v57  ;;  %v1580_v4 = vadd.f32 %v1579_v18, %v3378_v43  ;;  %v1854_v15 = vpop.f32.mrf.mxu0 }
 0x1f7   : > { %v2503_v16 = vpop.f32.mrf.mxu1 }
 0x1f8   : > { %2099 = vst.msk [vmem:[%s3448_s14 + $0xf8] sm:$0xff] %vm896_vm4, %v2051_v47  ;;  %v2049_v0 = vmax.f32 %v2001_v38, 0.0  ;;  %v2006_v10 = vadd.f32 %v3442_v42, %v1951_v8  ;;  %v1949_v52 = vadd.f32 %v1854_v15, %v1580_v4  ;;  %v1591_v5 = vadd.f32 %v2503_v16, %v3382_v23  ;;  %v2553_v1 = vpop.f32.mrf.mxu0 }
 0x1f9   : > { %v1582_v62 = vpop.f32.mrf.mxu1 }
 0x1fa   : > { %2097 = vst.msk [vmem:[%s3448_s14 + $0xe8] sm:$0xff] %vm896_vm4, %v2049_v0  ;;  %v2054_v56 = vmax.f32 %v2006_v10, 0.0  ;;  %v2004_v25 = vadd.f32 %v3442_v42, %v1949_v52  ;;  %v1952_v43 = vadd.f32 %v2553_v1, %v1591_v5  ;;  %v1583_v24 = vadd.f32 %v1582_v62, %v3386_v9  ;;  %v1857_v53 = vpop.f32.mrf.mxu0 }
 0x1fb   : > { %v2506_v37 = vpop.f32.mrf.mxu1 }
 0x1fc   : > { %2102 = vst.msk [vmem:[%s3448_s14 + $0x110] sm:$0xff] %vm896_vm4, %v2054_v56  ;;  %v2052_v36 = vmax.f32 %v2004_v25, 0.0  ;;  %v2007_v17 = vadd.f32 %v3442_v42, %v1952_v43  ;;  %v1950_v23 = vadd.f32 %v1857_v53, %v1583_v24  ;;  %v1604_v31 = vadd.f32 %v2506_v37, %v3388_v30  ;;  %v2556_v40 = vpop.f32.mrf.mxu0 }
 0x1fd   : > { %v1595_v26 = vpop.f32.mrf.mxu1 }
 0x1fe   : > { %2100 = vst.msk [vmem:[%s3448_s14 + $0x100] sm:$0xff] %vm896_vm4, %v2052_v36  ;;  %v2055_v51 = vmax.f32 %v2007_v17, 0.0  ;;  %v2005_v14 = vadd.f32 %v3442_v42, %v1950_v23  ;;  %v1955_v9 = vadd.f32 %v2556_v40, %v1604_v31  ;;  %v1596_v50 = vadd.f32 %v1595_v26, %v3394_v12  ;;  %v1870_v20 = vpop.f32.mrf.mxu0 }
 0x1ff   : > { %v2507_v3 = vpop.f32.mrf.mxu1 }
 0x200   : > { %2103 = vst.msk [vmem:[%s3448_s14 + $0x118] sm:$0xff] %vm896_vm4, %v2055_v51  ;;  %v2053_v7 = vmax.f32 %v2005_v14, 0.0  ;;  %v2010_v39 = vadd.f32 %v3442_v42, %v1955_v9  ;;  %v1953_v30 = vadd.f32 %v1870_v20, %v1596_v50  ;;  %v1607_v48 = vadd.f32 %v2507_v3, %v3398_v19  ;;  %v2557_v29 = vpop.f32.mrf.mxu0 }
 0x201   : > { %v1598_v45 = vpop.f32.mrf.mxu1 }
 0x202   : > { %2101 = vst.msk [vmem:[%s3448_s14 + $0x108] sm:$0xff] %vm896_vm4, %v2053_v7  ;;  %v2058_v13 = vmax.f32 %v2010_v39, 0.0  ;;  %v2008_v55 = vadd.f32 %v3442_v42, %v1953_v30  ;;  %v1956_v12 = vadd.f32 %v2557_v29, %v1607_v48  ;;  %v1599_v2 = vadd.f32 %v1598_v45, %v3402_v44  ;;  %v1873_v6 = vpop.f32.mrf.mxu0 }
 0x203   : > { %v2510_v22 = vpop.f32.mrf.mxu1 }
 0x204   : > { %2106 = vst.msk [vmem:[%s3448_s14 + $0x130] sm:$0xff] %vm896_vm4, %v2058_v13  ;;  %v2056_v59 = vmax.f32 %v2008_v55, 0.0  ;;  %v2011_v33 = vadd.f32 %v3442_v42, %v1956_v12  ;;  %v1954_v19 = vadd.f32 %v1873_v6, %v1599_v2  ;;  %v1620_v41 = vadd.f32 %v2510_v22, %v3404_v35  ;;  %v2560_v60 = vpop.f32.mrf.mxu0 }
 0x205   : > { %v1611_v46 = vpop.f32.mrf.mxu1 }
 0x206   : > { %2104 = vst.msk [vmem:[%s3448_s14 + $0x120] sm:$0xff] %vm896_vm4, %v2056_v59  ;;  %v2059_v54 = vmax.f32 %v2011_v33, 0.0  ;;  %v2009_v58 = vadd.f32 %v3442_v42, %v1954_v19  ;;  %v1959_v44 = vadd.f32 %v2560_v60, %v1620_v41  ;;  %v1612_v61 = vadd.f32 %v1611_v46, %v3410_v49  ;;  %v1886_v57 = vpop.f32.mrf.mxu0 }
 0x207   : > { %v2511_v11 = vpop.f32.mrf.mxu1 }
 0x208   : > { %2107 = vst.msk [vmem:[%s3448_s14 + $0x138] sm:$0xff] %vm896_vm4, %v2059_v54  ;;  %v2057_v18 = vmax.f32 %v2009_v58, 0.0  ;;  %v2014_v47 = vadd.f32 %v3442_v42, %v1959_v44  ;;  %v1957_v35 = vadd.f32 %v1886_v57, %v1612_v61  ;;  %v1623_v38 = vadd.f32 %v2511_v11, %v3414_v21  ;;  %v2561_v8 = vpop.f32.mrf.mxu0 }
 0x209   : > { %v1614_v4 = vpop.f32.mrf.mxu1 }
 0x20a   : > { %2105 = vst.msk [vmem:[%s3448_s14 + $0x128] sm:$0xff] %vm896_vm4, %v2057_v18  ;;  %v2062_v15 = vmax.f32 %v2014_v47, 0.0  ;;  %v2012_v16 = vadd.f32 %v3442_v42, %v1957_v35  ;;  %v1960_v49 = vadd.f32 %v2561_v8, %v1623_v38  ;;  %v1615_v0 = vadd.f32 %v1614_v4, %v3418_v27  ;;  %v1889_v10 = vpop.f32.mrf.mxu0 }
 0x20b   : > { %v2514_v52 = vpop.f32.mrf.mxu1 }
 0x20c   : > { %2110 = vst.msk [vmem:[%s3448_s14 + $0x150] sm:$0xff] %vm896_vm4, %v2062_v15  ;;  %v2060_v5 = vmax.f32 %v2012_v16, 0.0  ;;  %v2015_v1 = vadd.f32 %v3442_v42, %v1960_v49  ;;  %v1958_v21 = vadd.f32 %v1889_v10, %v1615_v0  ;;  %v1636_v62 = vadd.f32 %v2514_v52, %v3422_v28  ;;  %v2564_v56 = vpop.f32.mrf.mxu0 }
 0x20d   : > { %v1627_v25 = vpop.f32.mrf.mxu1 }
 0x20e   : > { %2108 = vst.msk [vmem:[%s3448_s14 + $0x140] sm:$0xff] %vm896_vm4, %v2060_v5  ;;  %v2063_v43 = vmax.f32 %v2015_v1, 0.0  ;;  %v2013_v24 = vadd.f32 %v3442_v42, %v1958_v21  ;;  %v1963_v27 = vadd.f32 %v2564_v56, %v1636_v62  ;;  %v1628_v53 = vadd.f32 %v1627_v25, %v3426_v34  ;;  %v1902_v37 = vpop.f32.mrf.mxu0 }
 0x20f   : > { %v2515_v36 = vpop.f32.mrf.mxu1 }
 0x210   : > { %2111 = vst.msk [vmem:[%s3448_s14 + $0x158] sm:$0xff] %vm896_vm4, %v2063_v43  ;;  %v2061_v17 = vmax.f32 %v2013_v24, 0.0  ;;  %v2018_v28 = vadd.f32 %v3442_v42, %v1963_v27  ;;  %v1961_v23 = vadd.f32 %v1902_v37, %v1628_v53  ;;  %v1639_v31 = vadd.f32 %v2515_v36, %v3430_v63  ;;  %v2565_v40 = vpop.f32.mrf.mxu0 }
 0x211   : > { %v1630_v26 = vpop.f32.mrf.mxu1 }
 0x212   : > { %2109 = vst.msk [vmem:[%s3448_s14 + $0x148] sm:$0xff] %vm896_vm4, %v2061_v17  ;;  %v2066_v51 = vmax.f32 %v2018_v28, 0.0  ;;  %v2016_v34 = vadd.f32 %v3442_v42, %v1961_v23  ;;  %v1964_v14 = vadd.f32 %v2565_v40, %v1639_v31  ;;  %v1631_v9 = vadd.f32 %v1630_v26, %v3434_v32  ;;  %v1905_v50 = vpop.f32.mrf.mxu0 }
 0x214   : > { %2114 = vst.msk [vmem:[%s3448_s14 + $0x170] sm:$0xff] %vm896_vm4, %v2066_v51  ;;  %v2064_v20 = vmax.f32 %v2016_v34, 0.0  ;;  %v2019_v3 = vadd.f32 %v3442_v42, %v1964_v14  ;;  %v1962_v7 = vadd.f32 %v1905_v50, %v1631_v9 }
 0x216   : > { %2112 = vst.msk [vmem:[%s3448_s14 + $0x160] sm:$0xff] %vm896_vm4, %v2064_v20  ;;  %v2067_v63 = vmax.f32 %v2019_v3, 0.0  ;;  %v2017_v39 = vadd.f32 %v3442_v42, %v1962_v7 }
 0x218   : > { %2115 = vst.msk [vmem:[%s3448_s14 + $0x178] sm:$0xff] %vm896_vm4, %v2067_v63  ;;  %v2065_v30 = vmax.f32 %v2017_v39, 0.0 }
 0x21a   : > { %2113 = vst.msk [vmem:[%s3448_s14 + $0x168] sm:$0xff] %vm896_vm4, %v2065_v30 }
 0x21b PF: > { %s14_s17 = sadd.s32 1, %s2655_s17   ;;  %s3651_s15 = smov %s2651_s16 }
 0x21c   : > { %p11_p5 = scmp.ge.s32.totalorder %s14_s17, 4   ;;  %s3652_s16 = smov %s3654_s18 }
 0x21e   :  { %13 = sbr.rel (!%p11_p5) target bundleno = 2 (0x2), region = 71 }

</bundles_post_ra>
